<compile_context>
chip_gen: v5e
topology: v5e:2x2
jax: 0.10.0
libtpu: 0.0.40
codegen_flags: <defaults>
</compile_context>

<pallas_src>
import functools

import jax
import jax.numpy as jnp
from jax.experimental import pallas as pl
from jax.experimental.pallas import tpu as pltpu


def mha_kernel(q_ref, k_ref, v_ref,
               wq_ref, bq_ref, wk_ref, bk_ref, wv_ref, bv_ref,
               o_ref, q_s, m_s, l_s, acc_s, *, h, matmul_dtype, approx_softmax):
    bt, n, d = q_ref.shape
    _, km, _ = k_ref.shape
    p = d // h
    cdt = matmul_dtype
    j = pl.program_id(1)                       # kv-tile axis (innermost, "arbitrary")

    @pl.when(j == 0)
    def _init():
        # Project queries once per batch tile (1/sqrt(p) is pre-folded into Wq/bq on the host),
        # lay them out head-major (bt*h, n, p), and reset the online-softmax state.
        xq = q_ref[...].reshape(bt * n, d).astype(cdt)
        q = jnp.dot(xq, wq_ref[...], preferred_element_type=jnp.float32) + bq_ref[...]
        q = q.reshape(bt, n, h, p).transpose(0, 2, 1, 3).reshape(bt * h, n, p)
        q_s[...] = q.astype(cdt)
        m_s[...] = jnp.full_like(m_s, -jnp.inf)
        l_s[...] = jnp.zeros_like(l_s)
        acc_s[...] = jnp.zeros_like(acc_s)

    # --- Project this key/value tile: folded (bt*km, d) slabs -> one MXU matmul each. ---
    xk = k_ref[...].reshape(bt * km, d).astype(cdt)
    xv = v_ref[...].reshape(bt * km, d).astype(cdt)
    k = jnp.dot(xk, wk_ref[...], preferred_element_type=jnp.float32) + bk_ref[...]
    v = jnp.dot(xv, wv_ref[...], preferred_element_type=jnp.float32) + bv_ref[...]
    # Head-major layout so all heads ride in a single batch dim of the dot_generals.
    k = k.reshape(bt, km, h, p).transpose(0, 2, 1, 3).reshape(bt * h, km, p).astype(cdt)
    v = v.reshape(bt, km, h, p).transpose(0, 2, 1, 3).reshape(bt * h, km, p).astype(cdt)

    # --- Online softmax over the kv axis; heads batched into single-batch-dim einsums. ---
    s = jnp.einsum('bnp,bmp->bnm', q_s[...], k,
                   preferred_element_type=jnp.float32)               # (bt*h, n, km)
    m_prev = m_s[...]
    m_new = jnp.maximum(m_prev, jnp.max(s, axis=-1, keepdims=True))
    alpha = jnp.exp(m_prev - m_new)
    p_exp = jnp.exp(s - m_new)
    l_s[...] = alpha * l_s[...] + jnp.sum(p_exp, axis=-1, keepdims=True)
    acc_s[...] = alpha * acc_s[...] + jnp.einsum('bnm,bmp->bnp', p_exp.astype(cdt), v,
                                                 preferred_element_type=jnp.float32)
    m_s[...] = m_new

    @pl.when(j == pl.num_programs(1) - 1)
    def _finalize():
        if approx_softmax:
            out = acc_s[...] * pl.reciprocal(l_s[...], approx=True)  # EUP slot, ~1e-4 rel err
        else:
            out = acc_s[...] / l_s[...]                              # exact parity with torch
        # Heads back onto the feature axis; ONE lane-dense (bt, n, d) store.
        out = out.reshape(bt, h, n, p).transpose(0, 2, 1, 3).reshape(bt, n, d)
        o_ref[...] = out.astype(o_ref.dtype)


def _tpu_defaults():
    """Best-effort per-generation defaults (v7x: 2 TCs / 64 MiB VMEM; v5e/v6e: 1 TC / 128 MiB)."""
    kind = ""
    try:
        kind = jax.devices()[0].device_kind.lower()
    except Exception:
        pass
    if "v7" in kind:
        return dict(num_tensorcores=2, target_rows=256, vmem_limit=48 * 1024 * 1024)
    return dict(num_tensorcores=1, target_rows=512, vmem_limit=64 * 1024 * 1024)


def _pick_b_tile(b, n, *, target_rows, num_tensorcores):
    """Fold batches so the projection matmuls see ~target_rows MXU rows.  Only require >=2 grid
    steps on 2-TC chips (v7x); on single-TC v5e/v6e one big tile avoids per-step overhead."""
    divs = [c for c in range(1, b + 1) if b % c == 0]
    cand = [c for c in divs if b // c >= num_tensorcores] or divs
    hit = [c for c in cand if c * n >= target_rows]
    return min(hit) if hit else max(cand)


def _pick_kv_tile(m, *, target=512):
    if m <= target:
        return m
    divs = [c for c in range(8, target + 1, 8) if m % c == 0]
    return max(divs) if divs else m     # fallback: no kv tiling (see padding TODO)


def multihead_attention(queries, keys, values, params, *, h,
                        matmul_dtype=jnp.float32, b_tile=None, kv_tile=None,
                        out_dtype=None, approx_softmax=False,
                        single_buffer_weights=False, vmem_limit_bytes=None):
    b, n, d = queries.shape
    _, m, _ = keys.shape
    assert values.shape == keys.shape
    assert d % h == 0
    p = d // h
    scale = p ** -0.5
    out_dtype = queries.dtype if out_dtype is None else out_dtype
    wq, bq, wk, bk, wv, bv = params

    # Host-side prep: fold the 1/sqrt(p) temperature into the query projection, and pre-cast the
    # weights / activations to matmul_dtype so the kernel never re-casts grid-invariant data and
    # DMA bytes are halved on the bf16 path.  Biases stay f32 (added to the f32 accumulators).
    wq = (wq.astype(jnp.float32) * scale).astype(matmul_dtype)
    bq = bq.astype(jnp.float32) * scale
    wk = wk.astype(matmul_dtype)
    wv = wv.astype(matmul_dtype)
    bk = bk.astype(jnp.float32)
    bv = bv.astype(jnp.float32)
    queries = queries.astype(matmul_dtype)
    keys = keys.astype(matmul_dtype)
    values = values.astype(matmul_dtype)

    hw = _tpu_defaults()
    vmem_limit = int(vmem_limit_bytes if vmem_limit_bytes is not None else hw["vmem_limit"])
    km = kv_tile if kv_tile is not None else _pick_kv_tile(m)
    assert m % km == 0 and (km == m or km % 8 == 0)
    bt = b_tile if b_tile is not None else _pick_b_tile(
        b, n, target_rows=hw["target_rows"], num_tensorcores=hw["num_tensorcores"])
    assert b % bt == 0

    # Cap the batch tile so double-buffered activation blocks + scratch stay inside the budget
    # (matters on v7x, which has half the VMEM of v5e/v6e).
    act_bytes = jnp.dtype(matmul_dtype).itemsize
    out_bytes = jnp.dtype(out_dtype).itemsize

    def _blk_bytes(c):
        blocks = 2 * c * (n + 2 * km) * d * act_bytes + 2 * c * n * d * out_bytes
        scratch = c * n * d * (act_bytes + 4) + 2 * c * h * n * 4
        return blocks + scratch

    while bt > 1 and _blk_bytes(bt) > vmem_limit // 2:
        bt = max(c for c in range(1, bt) if b % c == 0)

    grid = (b // bt, m // km)

    w_kwargs = dict(pipeline_mode=pl.Buffered(1)) if single_buffer_weights else {}
    w_spec = lambda shape: pl.BlockSpec(shape, lambda i, j: (0, 0), **w_kwargs)

    kernel = functools.partial(mha_kernel, h=h, matmul_dtype=matmul_dtype,
                               approx_softmax=approx_softmax)

    # Advisory cost estimate for the XLA scheduler (per call, at the chosen dtype widths).
    flops = 2 * b * d * d * (n + 2 * m) + 4 * b * n * m * d
    transcendentals = b * h * n * (m + m // km)
    bytes_accessed = (act_bytes * b * d * (n + 2 * m)     # activations in
                      + out_bytes * b * n * d             # output
                      + act_bytes * 3 * d * d + 4 * 3 * d)  # weights + biases (fetched once)

    return pl.pallas_call(
        kernel,
        out_shape=jax.ShapeDtypeStruct((b, n, d), out_dtype),
        grid_spec=pltpu.PrefetchScalarGridSpec(
            num_scalar_prefetch=0,
            grid=grid,
            in_specs=[
                pl.BlockSpec((bt, n, d), lambda i, j: (i, 0, 0)),    # queries (kv-invariant)
                pl.BlockSpec((bt, km, d), lambda i, j: (i, j, 0)),   # keys
                pl.BlockSpec((bt, km, d), lambda i, j: (i, j, 0)),   # values
                w_spec((d, d)), w_spec((1, d)),                      # Wq (pre-scaled), bq
                w_spec((d, d)), w_spec((1, d)),                      # Wk, bk
                w_spec((d, d)), w_spec((1, d)),                      # Wv, bv
            ],
            out_specs=pl.BlockSpec((bt, n, d), lambda i, j: (i, 0, 0)),
            scratch_shapes=[
                pltpu.VMEM((bt * h, n, p), matmul_dtype),   # head-major projected q
                pltpu.VMEM((bt * h, n, 1), jnp.float32),    # online-softmax running max
                pltpu.VMEM((bt * h, n, 1), jnp.float32),    # online-softmax running denom
                pltpu.VMEM((bt * h, n, p), jnp.float32),    # output accumulator
            ],
        ),
        compiler_params=pltpu.CompilerParams(
            dimension_semantics=("parallel", "arbitrary"),
            vmem_limit_bytes=vmem_limit,
        ),
        cost_estimate=pl.CostEstimate(
            flops=int(flops),
            transcendentals=int(transcendentals),
            bytes_accessed=int(bytes_accessed),
        ),
    )(queries, keys, values, wq, bq, wk, bk, wv, bv)


def reference_mha(queries, keys, values, params, *, h):
    """Pure-JAX reference mirroring the PyTorch MultiheadAttention forward (masks=None)."""
    wq, bq, wk, bk, wv, bv = params
    b, n, d = queries.shape
    _, m, _ = keys.shape
    p = d // h
    q = queries @ wq + bq[0]
    k = keys @ wk + bk[0]
    v = values @ wv + bv[0]
    q = q.reshape(b, n, h, p).transpose(2, 0, 1, 3)   # (h, b, n, p)
    k = k.reshape(b, m, h, p).transpose(2, 0, 1, 3)
    v = v.reshape(b, m, h, p).transpose(2, 0, 1, 3)
    s = jnp.einsum('hbnp,hbmp->hbnm', q, k) / (p ** 0.5)
    a = jax.nn.softmax(s, axis=-1)
    o = jnp.einsum('hbnm,hbmp->hbnp', a, v)
    return o.transpose(1, 2, 0, 3).reshape(b, n, d)


def init_params(key, d):
    ks = jax.random.split(key, 6)
    bound = 1.0 / (d ** 0.5)
    u = lambda k, shape: jax.random.uniform(k, shape, jnp.float32, -bound, bound)
    wq, bq = u(ks[0], (d, d)), u(ks[1], (1, d))
    wk, bk = u(ks[2], (d, d)), u(ks[3], (1, d))
    wv, bv = u(ks[4], (d, d)), u(ks[5], (1, d))
    return (wq, bq, wk, bk, wv, bv)


if __name__ == "__main__":
    b, n, m, d, h = 2, 8, 16, 32, 4            # m > kv_tile so the online softmax runs 2 kv steps

    key = jax.random.PRNGKey(0)
    kq, kk, kv, kp = jax.random.split(key, 4)
    queries = jax.random.normal(kq, (b, n, d), jnp.float32)
    keys = jax.random.normal(kk, (b, m, d), jnp.float32)
    values = jax.random.normal(kv, (b, m, d), jnp.float32)
    params = init_params(kp, d)

    ref = reference_mha(queries, keys, values, params, h=h)

    # f32 path: exact parity with the float32 PyTorch module (exact softmax divide).
    out = multihead_attention(queries, keys, values, params, h=h, kv_tile=8)
    out = jax.block_until_ready(out)
    assert out.shape == (b, n, d)
    assert jnp.allclose(out, ref, atol=1e-3, rtol=1e-3), "f32 mismatch vs reference"

    # bf16 MXU path (recommended production default on v5e/v6e/v7x): looser tolerance.
    out_bf16 = multihead_attention(queries, keys, values, params, h=h, kv_tile=8,
                                   matmul_dtype=jnp.bfloat16, out_dtype=jnp.float32)
    out_bf16 = jax.block_until_ready(out_bf16)
    assert jnp.allclose(out_bf16, ref, atol=1e-1, rtol=1e-1), "bf16 mismatch vs reference"

    print("KERNEL_OK")
</pallas_src>

<mosaic_0001>
module attributes {stable_mosaic.version = 11 : i64} {
  func.func @mha_kernel(%arg0: i32, %arg1: i32, %arg2: memref<2x8x32xf32, #tpu.memory_space<vmem>>, %arg3: memref<2x8x32xf32, #tpu.memory_space<vmem>>, %arg4: memref<2x8x32xf32, #tpu.memory_space<vmem>>, %arg5: memref<32x32xf32, #tpu.memory_space<vmem>>, %arg6: memref<1x32xf32, #tpu.memory_space<vmem>>, %arg7: memref<32x32xf32, #tpu.memory_space<vmem>>, %arg8: memref<1x32xf32, #tpu.memory_space<vmem>>, %arg9: memref<32x32xf32, #tpu.memory_space<vmem>>, %arg10: memref<1x32xf32, #tpu.memory_space<vmem>>, %arg11: memref<2x8x32xf32, #tpu.memory_space<vmem>>, %arg12: memref<8x8x8xf32, #tpu.memory_space<vmem>>, %arg13: memref<8x8x1xf32, #tpu.memory_space<vmem>>, %arg14: memref<8x8x1xf32, #tpu.memory_space<vmem>>, %arg15: memref<8x8x8xf32, #tpu.memory_space<vmem>>) attributes {dimension_semantics = [#tpu.dimension_semantics<parallel>, #tpu.dimension_semantics<arbitrary>], iteration_bounds = array<i64: 1, 2>, scalar_prefetch = 0 : i64, scratch_operands = 4 : i64, tpu.core_type = #tpu.core_type<tc>, window_params = [{transform_indices = @transform_0, window_bounds = array<i64: 2, 8, 32>}, {transform_indices = @transform_1, window_bounds = array<i64: 2, 8, 32>}, {transform_indices = @transform_2, window_bounds = array<i64: 2, 8, 32>}, {pipeline_mode = #tpu.pipeline_mode<synchronous>, transform_indices = @transform_3, window_bounds = array<i64: 32, 32>}, {pipeline_mode = #tpu.pipeline_mode<synchronous>, transform_indices = @transform_4, window_bounds = array<i64: 1, 32>}, {pipeline_mode = #tpu.pipeline_mode<synchronous>, transform_indices = @transform_5, window_bounds = array<i64: 32, 32>}, {pipeline_mode = #tpu.pipeline_mode<synchronous>, transform_indices = @transform_6, window_bounds = array<i64: 1, 32>}, {pipeline_mode = #tpu.pipeline_mode<synchronous>, transform_indices = @transform_7, window_bounds = array<i64: 32, 32>}, {pipeline_mode = #tpu.pipeline_mode<synchronous>, transform_indices = @transform_8, window_bounds = array<i64: 1, 32>}, {transform_indices = @transform_9, window_bounds = array<i64: 2, 8, 32>}]} {
    %c0_i32 = arith.constant 0 : i32
    %0 = arith.cmpi eq, %arg1, %c0_i32 : i32
    %1 = arith.extui %0 : i1 to i32
    %c0_i32_0 = arith.constant 0 : i32
    %2 = arith.cmpi ne, %1, %c0_i32_0 : i32
    scf.if %2 {
      %c0_41 = arith.constant 0 : index
      %c0_42 = arith.constant 0 : index
      %c0_43 = arith.constant 0 : index
      %50 = vector.load %arg2[%c0_41, %c0_42, %c0_43] : memref<2x8x32xf32, #tpu.memory_space<vmem>>, vector<2x8x32xf32>
      %51 = vector.shape_cast %50 : vector<2x8x32xf32> to vector<16x32xf32>
      %c0_44 = arith.constant 0 : index
      %c0_45 = arith.constant 0 : index
      %52 = vector.load %arg5[%c0_44, %c0_45] : memref<32x32xf32, #tpu.memory_space<vmem>>, vector<32x32xf32>
      %cst_46 = arith.constant dense<0.000000e+00> : vector<16x32xf32>
      %53 = tpu.matmul %51, %52, %cst_46 {dimension_numbers = #tpu.dot_dimension_numbers<[1], [0], [0], [1], [0, 0, 1, 1], [], []>} : vector<16x32xf32>, vector<32x32xf32>, vector<16x32xf32> -> vector<16x32xf32>
      %c0_47 = arith.constant 0 : index
      %c0_48 = arith.constant 0 : index
      %54 = vector.load %arg6[%c0_47, %c0_48] : memref<1x32xf32, #tpu.memory_space<vmem>>, vector<1x32xf32>
      %55 = vector.broadcast %54 : vector<1x32xf32> to vector<16x32xf32>
      %56 = arith.addf %53, %55 : vector<16x32xf32>
      %57 = vector.shape_cast %56 : vector<16x32xf32> to vector<2x8x4x8xf32>
      %58 = tpu.transpose %57, [0, 2, 1, 3] : vector<2x8x4x8xf32> -> vector<2x4x8x8xf32>
      %59 = vector.shape_cast %58 : vector<2x4x8x8xf32> to vector<8x8x8xf32>
      %c0_49 = arith.constant 0 : index
      %c0_50 = arith.constant 0 : index
      %c0_51 = arith.constant 0 : index
      %60 = vector.load %arg12[%c0_49, %c0_50, %c0_51] : memref<8x8x8xf32, #tpu.memory_space<vmem>>, vector<8x8x8xf32>
      tpu.vector_store %arg12[%c0_49, %c0_50, %c0_51], %59 {strides = array<i32>} : memref<8x8x8xf32, #tpu.memory_space<vmem>>, vector<8x8x8xf32>,
      %cst_52 = arith.constant 0xFF800000 : f32
      %61 = vector.broadcast %cst_52 : f32 to vector<8x8x1xf32>
      %c0_53 = arith.constant 0 : index
      %c0_54 = arith.constant 0 : index
      %c0_55 = arith.constant 0 : index
      %62 = vector.load %arg13[%c0_53, %c0_54, %c0_55] : memref<8x8x1xf32, #tpu.memory_space<vmem>>, vector<8x8x1xf32>
      tpu.vector_store %arg13[%c0_53, %c0_54, %c0_55], %61 {strides = array<i32>} : memref<8x8x1xf32, #tpu.memory_space<vmem>>, vector<8x8x1xf32>,
      %cst_56 = arith.constant 0.000000e+00 : f32
      %63 = vector.broadcast %cst_56 : f32 to vector<8x8x1xf32>
      %c0_57 = arith.constant 0 : index
      %c0_58 = arith.constant 0 : index
      %c0_59 = arith.constant 0 : index
      %64 = vector.load %arg14[%c0_57, %c0_58, %c0_59] : memref<8x8x1xf32, #tpu.memory_space<vmem>>, vector<8x8x1xf32>
      tpu.vector_store %arg14[%c0_57, %c0_58, %c0_59], %63 {strides = array<i32>} : memref<8x8x1xf32, #tpu.memory_space<vmem>>, vector<8x8x1xf32>,
      %cst_60 = arith.constant 0.000000e+00 : f32
      %65 = vector.broadcast %cst_60 : f32 to vector<8x8x8xf32>
      %c0_61 = arith.constant 0 : index
      %c0_62 = arith.constant 0 : index
      %c0_63 = arith.constant 0 : index
      %66 = vector.load %arg15[%c0_61, %c0_62, %c0_63] : memref<8x8x8xf32, #tpu.memory_space<vmem>>, vector<8x8x8xf32>
      tpu.vector_store %arg15[%c0_61, %c0_62, %c0_63], %65 {strides = array<i32>} : memref<8x8x8xf32, #tpu.memory_space<vmem>>, vector<8x8x8xf32>,
    } else {
    }
    %c0 = arith.constant 0 : index
    %c0_1 = arith.constant 0 : index
    %c0_2 = arith.constant 0 : index
    %3 = vector.load %arg3[%c0, %c0_1, %c0_2] : memref<2x8x32xf32, #tpu.memory_space<vmem>>, vector<2x8x32xf32>
    %4 = vector.shape_cast %3 : vector<2x8x32xf32> to vector<16x32xf32>
    %c0_3 = arith.constant 0 : index
    %c0_4 = arith.constant 0 : index
    %c0_5 = arith.constant 0 : index
    %5 = vector.load %arg4[%c0_3, %c0_4, %c0_5] : memref<2x8x32xf32, #tpu.memory_space<vmem>>, vector<2x8x32xf32>
    %6 = vector.shape_cast %5 : vector<2x8x32xf32> to vector<16x32xf32>
    %c0_6 = arith.constant 0 : index
    %c0_7 = arith.constant 0 : index
    %7 = vector.load %arg7[%c0_6, %c0_7] : memref<32x32xf32, #tpu.memory_space<vmem>>, vector<32x32xf32>
    %cst = arith.constant dense<0.000000e+00> : vector<16x32xf32>
    %8 = tpu.matmul %4, %7, %cst {dimension_numbers = #tpu.dot_dimension_numbers<[1], [0], [0], [1], [0, 0, 1, 1], [], []>} : vector<16x32xf32>, vector<32x32xf32>, vector<16x32xf32> -> vector<16x32xf32>
    %c0_8 = arith.constant 0 : index
    %c0_9 = arith.constant 0 : index
    %9 = vector.load %arg8[%c0_8, %c0_9] : memref<1x32xf32, #tpu.memory_space<vmem>>, vector<1x32xf32>
    %10 = vector.broadcast %9 : vector<1x32xf32> to vector<16x32xf32>
    %11 = arith.addf %8, %10 : vector<16x32xf32>
    %c0_10 = arith.constant 0 : index
    %c0_11 = arith.constant 0 : index
    %12 = vector.load %arg9[%c0_10, %c0_11] : memref<32x32xf32, #tpu.memory_space<vmem>>, vector<32x32xf32>
    %cst_12 = arith.constant dense<0.000000e+00> : vector<16x32xf32>
    %13 = tpu.matmul %6, %12, %cst_12 {dimension_numbers = #tpu.dot_dimension_numbers<[1], [0], [0], [1], [0, 0, 1, 1], [], []>} : vector<16x32xf32>, vector<32x32xf32>, vector<16x32xf32> -> vector<16x32xf32>
    %c0_13 = arith.constant 0 : index
    %c0_14 = arith.constant 0 : index
    %14 = vector.load %arg10[%c0_13, %c0_14] : memref<1x32xf32, #tpu.memory_space<vmem>>, vector<1x32xf32>
    %15 = vector.broadcast %14 : vector<1x32xf32> to vector<16x32xf32>
    %16 = arith.addf %13, %15 : vector<16x32xf32>
    %17 = vector.shape_cast %11 : vector<16x32xf32> to vector<2x8x4x8xf32>
    %18 = tpu.transpose %17, [0, 2, 1, 3] : vector<2x8x4x8xf32> -> vector<2x4x8x8xf32>
    %19 = vector.shape_cast %18 : vector<2x4x8x8xf32> to vector<8x8x8xf32>
    %20 = vector.shape_cast %16 : vector<16x32xf32> to vector<2x8x4x8xf32>
    %21 = tpu.transpose %20, [0, 2, 1, 3] : vector<2x8x4x8xf32> -> vector<2x4x8x8xf32>
    %22 = vector.shape_cast %21 : vector<2x4x8x8xf32> to vector<8x8x8xf32>
    %c0_15 = arith.constant 0 : index
    %c0_16 = arith.constant 0 : index
    %c0_17 = arith.constant 0 : index
    %23 = vector.load %arg12[%c0_15, %c0_16, %c0_17] : memref<8x8x8xf32, #tpu.memory_space<vmem>>, vector<8x8x8xf32>
    "tpu.trace_start"() <{level = 10 : i32, message = "bnp,bmp->bnm"}> : () -> ()
    %cst_18 = arith.constant dense<0.000000e+00> : vector<8x8x8xf32>
    %24 = tpu.matmul %23, %19, %cst_18 {dimension_numbers = #tpu.dot_dimension_numbers<[2], [2], [1], [1], [0, 0, 0, 1, 1, 1], [0], [0]>} : vector<8x8x8xf32>, vector<8x8x8xf32>, vector<8x8x8xf32> -> vector<8x8x8xf32>
    "tpu.trace_stop"() : () -> ()
    %c0_19 = arith.constant 0 : index
    %c0_20 = arith.constant 0 : index
    %c0_21 = arith.constant 0 : index
    %25 = vector.load %arg13[%c0_19, %c0_20, %c0_21] : memref<8x8x1xf32, #tpu.memory_space<vmem>>, vector<8x8x1xf32>
    %cst_22 = arith.constant dense<0xFF800000> : vector<8x8xf32>
    %26 = vector.multi_reduction <maximumf>, %24, %cst_22 [2] : vector<8x8x8xf32> to vector<8x8xf32>
    %27 = vector.shape_cast %26 : vector<8x8xf32> to vector<8x8x1xf32>
    %28 = arith.maximumf %25, %27 : vector<8x8x1xf32>
    %29 = arith.subf %25, %28 : vector<8x8x1xf32>
    %30 = math.exp %29 : vector<8x8x1xf32>
    %31 = vector.broadcast %28 : vector<8x8x1xf32> to vector<8x8x8xf32>
    %32 = arith.subf %24, %31 : vector<8x8x8xf32>
    %33 = math.exp %32 : vector<8x8x8xf32>
    %c0_23 = arith.constant 0 : index
    %c0_24 = arith.constant 0 : index
    %c0_25 = arith.constant 0 : index
    %34 = vector.load %arg14[%c0_23, %c0_24, %c0_25] : memref<8x8x1xf32, #tpu.memory_space<vmem>>, vector<8x8x1xf32>
    %35 = arith.mulf %30, %34 : vector<8x8x1xf32>
    %cst_26 = arith.constant dense<0.000000e+00> : vector<8x8xf32>
    %36 = vector.multi_reduction <add>, %33, %cst_26 [2] : vector<8x8x8xf32> to vector<8x8xf32>
    %37 = vector.shape_cast %36 : vector<8x8xf32> to vector<8x8x1xf32>
    %38 = arith.addf %35, %37 : vector<8x8x1xf32>
    %c0_27 = arith.constant 0 : index
    %c0_28 = arith.constant 0 : index
    %c0_29 = arith.constant 0 : index
    %39 = vector.load %arg14[%c0_27, %c0_28, %c0_29] : memref<8x8x1xf32, #tpu.memory_space<vmem>>, vector<8x8x1xf32>
    tpu.vector_store %arg14[%c0_27, %c0_28, %c0_29], %38 {strides = array<i32>} : memref<8x8x1xf32, #tpu.memory_space<vmem>>, vector<8x8x1xf32>,
    %c0_30 = arith.constant 0 : index
    %c0_31 = arith.constant 0 : index
    %c0_32 = arith.constant 0 : index
    %40 = vector.load %arg15[%c0_30, %c0_31, %c0_32] : memref<8x8x8xf32, #tpu.memory_space<vmem>>, vector<8x8x8xf32>
    %41 = vector.broadcast %30 : vector<8x8x1xf32> to vector<8x8x8xf32>
    %42 = arith.mulf %41, %40 : vector<8x8x8xf32>
    "tpu.trace_start"() <{level = 10 : i32, message = "bnm,bmp->bnp"}> : () -> ()
    %cst_33 = arith.constant dense<0.000000e+00> : vector<8x8x8xf32>
    %43 = tpu.matmul %33, %22, %cst_33 {dimension_numbers = #tpu.dot_dimension_numbers<[2], [1], [1], [2], [0, 0, 0, 1, 1, 2], [0], [0]>} : vector<8x8x8xf32>, vector<8x8x8xf32>, vector<8x8x8xf32> -> vector<8x8x8xf32>
    "tpu.trace_stop"() : () -> ()
    %44 = arith.addf %42, %43 : vector<8x8x8xf32>
    %c0_34 = arith.constant 0 : index
    %c0_35 = arith.constant 0 : index
    %c0_36 = arith.constant 0 : index
    %45 = vector.load %arg15[%c0_34, %c0_35, %c0_36] : memref<8x8x8xf32, #tpu.memory_space<vmem>>, vector<8x8x8xf32>
    tpu.vector_store %arg15[%c0_34, %c0_35, %c0_36], %44 {strides = array<i32>} : memref<8x8x8xf32, #tpu.memory_space<vmem>>, vector<8x8x8xf32>,
    %c0_37 = arith.constant 0 : index
    %c0_38 = arith.constant 0 : index
    %c0_39 = arith.constant 0 : index
    %46 = vector.load %arg13[%c0_37, %c0_38, %c0_39] : memref<8x8x1xf32, #tpu.memory_space<vmem>>, vector<8x8x1xf32>
    tpu.vector_store %arg13[%c0_37, %c0_38, %c0_39], %28 {strides = array<i32>} : memref<8x8x1xf32, #tpu.memory_space<vmem>>, vector<8x8x1xf32>,
    %c1_i32 = arith.constant 1 : i32
    %47 = arith.cmpi eq, %arg1, %c1_i32 : i32
    %48 = arith.extui %47 : i1 to i32
    %c0_i32_40 = arith.constant 0 : i32
    %49 = arith.cmpi ne, %48, %c0_i32_40 : i32
    scf.if %49 {
      %c0_41 = arith.constant 0 : index
      %c0_42 = arith.constant 0 : index
      %c0_43 = arith.constant 0 : index
      %50 = vector.load %arg15[%c0_41, %c0_42, %c0_43] : memref<8x8x8xf32, #tpu.memory_space<vmem>>, vector<8x8x8xf32>
      %c0_44 = arith.constant 0 : index
      %c0_45 = arith.constant 0 : index
      %c0_46 = arith.constant 0 : index
      %51 = vector.load %arg14[%c0_44, %c0_45, %c0_46] : memref<8x8x1xf32, #tpu.memory_space<vmem>>, vector<8x8x1xf32>
      %52 = vector.broadcast %51 : vector<8x8x1xf32> to vector<8x8x8xf32>
      %53 = arith.divf %50, %52 : vector<8x8x8xf32>
      %54 = vector.shape_cast %53 : vector<8x8x8xf32> to vector<2x4x8x8xf32>
      %55 = tpu.transpose %54, [0, 2, 1, 3] : vector<2x4x8x8xf32> -> vector<2x8x4x8xf32>
      %56 = vector.shape_cast %55 : vector<2x8x4x8xf32> to vector<2x8x32xf32>
      %c0_47 = arith.constant 0 : index
      %c0_48 = arith.constant 0 : index
      %c0_49 = arith.constant 0 : index
      %57 = vector.load %arg11[%c0_47, %c0_48, %c0_49] : memref<2x8x32xf32, #tpu.memory_space<vmem>>, vector<2x8x32xf32>
      tpu.vector_store %arg11[%c0_47, %c0_48, %c0_49], %56 {strides = array<i32>} : memref<2x8x32xf32, #tpu.memory_space<vmem>>, vector<2x8x32xf32>,
    } else {
    }
    return
  }
  func.func @transform_0(%arg0: i32, %arg1: i32) -> (i32, i32, i32) {
    %c0_i32 = arith.constant 0 : i32
    %c0_i32_0 = arith.constant 0 : i32
    %c0_i32_1 = arith.constant 0 : i32
    return %arg0, %c0_i32, %c0_i32_0 : i32, i32, i32
  }
  func.func @transform_1(%arg0: i32, %arg1: i32) -> (i32, i32, i32) {
    %c0_i32 = arith.constant 0 : i32
    %c0_i32_0 = arith.constant 0 : i32
    return %arg0, %arg1, %c0_i32 : i32, i32, i32
  }
  func.func @transform_2(%arg0: i32, %arg1: i32) -> (i32, i32, i32) {
    %c0_i32 = arith.constant 0 : i32
    %c0_i32_0 = arith.constant 0 : i32
    return %arg0, %arg1, %c0_i32 : i32, i32, i32
  }
  func.func @transform_3(%arg0: i32, %arg1: i32) -> (i32, i32) {
    %c0_i32 = arith.constant 0 : i32
    %c0_i32_0 = arith.constant 0 : i32
    %c0_i32_1 = arith.constant 0 : i32
    return %c0_i32, %c0_i32_0 : i32, i32
  }
  func.func @transform_4(%arg0: i32, %arg1: i32) -> (i32, i32) {
    %c0_i32 = arith.constant 0 : i32
    %c0_i32_0 = arith.constant 0 : i32
    %c0_i32_1 = arith.constant 0 : i32
    return %c0_i32, %c0_i32_0 : i32, i32
  }
  func.func @transform_5(%arg0: i32, %arg1: i32) -> (i32, i32) {
    %c0_i32 = arith.constant 0 : i32
    %c0_i32_0 = arith.constant 0 : i32
    %c0_i32_1 = arith.constant 0 : i32
    return %c0_i32, %c0_i32_0 : i32, i32
  }
  func.func @transform_6(%arg0: i32, %arg1: i32) -> (i32, i32) {
    %c0_i32 = arith.constant 0 : i32
    %c0_i32_0 = arith.constant 0 : i32
    %c0_i32_1 = arith.constant 0 : i32
    return %c0_i32, %c0_i32_0 : i32, i32
  }
  func.func @transform_7(%arg0: i32, %arg1: i32) -> (i32, i32) {
    %c0_i32 = arith.constant 0 : i32
    %c0_i32_0 = arith.constant 0 : i32
    %c0_i32_1 = arith.constant 0 : i32
    return %c0_i32, %c0_i32_0 : i32, i32
  }
  func.func @transform_8(%arg0: i32, %arg1: i32) -> (i32, i32) {
    %c0_i32 = arith.constant 0 : i32
    %c0_i32_0 = arith.constant 0 : i32
    %c0_i32_1 = arith.constant 0 : i32
    return %c0_i32, %c0_i32_0 : i32, i32
  }
  func.func @transform_9(%arg0: i32, %arg1: i32) -> (i32, i32, i32) {
    %c0_i32 = arith.constant 0 : i32
    %c0_i32_0 = arith.constant 0 : i32
    %c0_i32_1 = arith.constant 0 : i32
    return %arg0, %c0_i32, %c0_i32_0 : i32, i32, i32
  }
}

</mosaic_0001>

<bundles_post_ra>
// kernel: tpu_custom_call.1
= control target key start
LH: loop header
LB: loop body
LE: loop exit
PB: predicated region body
PF: predicated region fallthrough
CT: control target
= control target key end

     0   :  { %s4075_s0 = inlined_call_operand.hbm [shape: f32[2,8,32], index: 0, kind: input, shape index: {}]   ;;  %s4076_s1 = inlined_call_operand.hbm [shape: f32[2,16,32], index: 1, kind: input, shape index: {}]   ;;  %s4077_s2 = inlined_call_operand.hbm [shape: f32[2,16,32], index: 2, kind: input, shape index: {}]   ;;  %s4078_s3 = inlined_call_operand.hbm [shape: f32[32,32], index: 3, kind: input, shape index: {}]   ;;  %s4079_s4 = inlined_call_operand.vmem [shape: f32[1,32], index: 4, kind: input, shape index: {}]   ;;  %s4080_s5 = inlined_call_operand.hbm [shape: f32[32,32], index: 5, kind: input, shape index: {}]   ;;  %s4081_s6 = inlined_call_operand.vmem [shape: f32[1,32], index: 6, kind: input, shape index: {}]   ;;  %s4082_s7 = inlined_call_operand.hbm [shape: f32[32,32], index: 7, kind: input, shape index: {}]   ;;  %s4083_s8 = inlined_call_operand.vmem [shape: f32[1,32], index: 8, kind: input, shape index: {}]   ;;  %s4084_s9 = inlined_call_operand.hbm [shape: f32[2,8,32], index: 9, kind: output, shape index: {}]  }
   0x1   :  { %4093 = sst [smem:[#allocation28_spill]] %s4076_s1 }
   0x2   :  { %4094 = sst [smem:[#allocation29_spill]] %s4077_s2 }
   0x3   :  { %4095 = sst [smem:[#allocation30_spill]] %s4078_s3 }
   0x4   :  { %4096 = sst [smem:[#allocation31_spill]] %s4083_s8 }
   0x5   :  { %4097 = sst [smem:[#allocation32_spill]] %s4084_s9 }
   0x6   :  { %14 = vsyncpa [#allocation7], 0 }
   0x7   :  { %15 = vsyncpa [#allocation10], 0 }
   0x8   :  { %17 = vsyncpa [#allocation10 + $0x1], 0 }
   0x9   :  { %18 = vsyncpa [#allocation13], 0 }
   0xa   :  { %19 = vsyncpa [#allocation16], 0 }
   0xb   :  { %20 = vsyncpa [#allocation8], 0  ;;  %s3218_s30 = smov 0   ;;  %s3220_s10 = smov 0  }
   0xc   :  { %s3222_s11 = smov 0   ;;  %s3224_s12 = smov 0  }
   0xd   :  { %s3226_s13 = smov 0   ;;  %s3228_s14 = smov 0  }
   0xe LB: > { %4098 = sst [smem:[#allocation23_spill]] %s3127_s11  ;;  %s3247_s15 = sadd.s32 4294967295, %s3139_s14   ;;  %s3139_s14 = sphi %s3228_s14, %s26_s14   ;;  %s3135_s13 = sphi %s3226_s13, %s4131_s13   ;;  %s3131_s12 = sphi %s3224_s12, %s4130_s12   ;;  %s3127_s11 = sphi %s3222_s11, %s4129_s11   ;;  %s3123_s10 = sphi %s3220_s10, %s4133_s10   ;;  %s3119_s30 = sphi %s3218_s30, %s4132_s30  }
   0xf   : > { %4099 = sst [smem:[#allocation24_spill]] %s3135_s13  ;;  %p86_p0 = scmp.ne.s32.totalorder %s3123_s10, %s3119_s30 }
  0x10   : > { %4100 = sst [smem:[#allocation25_spill]] %s3139_s14  ;;  %p87_p1 = scmp.eq.s32.totalorder %s3247_s15, 0 }
  0x11   : > { %p2606_p2 = scmp.ge.s32.totalorder %s3139_s14, 1  ;;  %p277_p3 = scmp.lt.s32.totalorder %s3139_s14, 3 }
  0x12   : > { %p3255_p4 = por %p87_p1, %p86_p0  ;;  %s4103_s3 = sld [smem:[#allocation30_spill]] }
  0x13   : > { %p3259_p5 = pnand %p2606_p2, %p277_p3  ;;  %s3141_s21 = smov [#allocation12]  }
  0x14   : > { %s307_s22 = sshll.u32 %s3141_s21, 4  ;;  %s4085_s24 = smov 128   ;;  %s308_s22 = int_to_ptr.vmem [resolvable:$true] %s307_s22 }
  0x15   : > { %p2687_p6 = pneg %p3259_p5  ;;  %s4087_s25 = smov 8  }
  0x16   : > { %s35_s26 = sadd.s32 1, %s3135_s13  ;;  %s73_s27 = sadd.s32 1, %s3127_s11 }
  0x17   : > { %p3270_p7 = pnand %p2687_p6, %p87_p1  ;;  %p36_p8 = scmp.ge.s32.totalorder %s35_s26, 2 }
  0x18   : > { %s305_s20 = sshll.u32 %s4103_s3, 4  ;;  %p80_p9 = scmp.ne.s32.totalorder %s3127_s11, %s3123_s10  ;;  %s306_s20 = int_to_ptr.hbm [resolvable:$true] %s305_s20 }
  0x19   : > { %2693 = dma.hbm_to_vmem [thread:$0]  (!%p3270_p7), %s306_s20, 512, %s308_s22, [#allocation13], %s4085_s24, %s4085_s24, %s4087_s25  }
  0x1a   : > { %p81_p10 = scmp.eq.s32.totalorder %s3139_s14, 0  ;;  %s4135_s26 = smov (%p36_p8, %s35_s26), 0 }
  0x1b   : > { %4105 = sst [smem:[#allocation26_spill]] %s4135_s26  ;;  %p2711_p12 = scmp.lt.s32.totalorder %s3139_s14, 2 }
  0x1c   : > { %p3286_p11 = por %p81_p10, %p80_p9  ;;  %s69_s29 = ssub.s32 %s3135_s13, %s4135_s26 }
  0x1d   : > { %s358_s30 = sand.u32 1, %s3139_s14   ;;  %p71_p13 = scmp.eq.s32.totalorder %s69_s29, 0 }
  0x1e   : > { %s360_s18 = sand.u32 1, %s3127_s11   ;;  %s2613_s19 = sshll.u32 %s3135_s13, 3 }
  0x1f   : > { %s3297_s20 = scalar_select %p71_p13, %s3127_s11, %s73_s27  }
  0x20   : > { %s2612_s21 = sshll.u32 %s360_s18, 4  ;;  %s4108_s1 = sld [smem:[#allocation28_spill]] }
  0x21   : > { %4107 = sst [smem:[#allocation27_spill]] %s3297_s20  ;;  %s362_s9 = scalar_lea.vmem [#allocation9], %s2612_s21 }
  0x22   : > { %s372_s8 = sshll.u32 %s362_s9, 4  ;;  %p3306_p0 = pnand %p2711_p12, %p3286_p11  ;;  %s373_s8 = int_to_ptr.vmem [resolvable:$true] %s372_s8 }
  0x23   : > { %s4110_s2 = sld [smem:[#allocation29_spill]]  ;;  %s3313_s13 = scalar_lea.sflag [#allocation10], %s358_s30 }
  0x24   : > { %s3144_s24 = smov 256   ;;  %s4112_s9 = smov 128  }
  0x25   : > { %s386_s22 = scalar_lea.vmem [#allocation11], %s2612_s21  ;;  %s291_s14 = sshll.u32 %s4075_s0, 4  ;;  %s292_s14 = int_to_ptr.hbm [resolvable:$true] %s291_s14 }
  0x26   : > { %s369_s25 = scalar_lea.hbm %s4108_s1, %s2613_s19  ;;  %s396_s1 = sshll.u32 %s386_s22, 4  ;;  %s397_s1 = int_to_ptr.vmem [resolvable:$true] %s396_s1 }
  0x27   : > { %s370_s3 = sshll.u32 %s369_s25, 4  ;;  %s4111_s25 = smov 8   ;;  %s371_s3 = int_to_ptr.hbm [resolvable:$true] %s370_s3 }
  0x28   : > { %2703 = dma.hbm_to_vmem [thread:$0]  (!%p3306_p0), %s371_s3, 256, %s373_s8, %s3313_s13, %s3144_s24, %s4112_s9, %s4111_s25  }
  0x29   : > { %s393_s18 = scalar_lea.hbm %s4110_s2, %s2613_s19  ;;  %s322_s30 = sshll.u32 %s4080_s5, 4  ;;  %s323_s30 = int_to_ptr.hbm [resolvable:$true] %s322_s30 }
  0x2a   : > { %s394_s28 = sshll.u32 %s393_s18, 4  ;;  %s3145_s27 = smov [#allocation6]   ;;  %s395_s28 = int_to_ptr.hbm [resolvable:$true] %s394_s28 }
  0x2b   : > { %s293_s2 = sshll.u32 %s3145_s27, 4  ;;  %s3146_s3 = smov [#allocation14]   ;;  %s294_s2 = int_to_ptr.vmem [resolvable:$true] %s293_s2 }
  0x2c   : > { %2690 = dma.hbm_to_vmem [thread:$0]  (!%p3270_p7), %s292_s14, 256, %s294_s2, [#allocation7], %s4112_s9, %s4112_s9, %s4111_s25  }
  0x2d   : > { %s324_s8 = sshll.u32 %s3146_s3, 4  ;;  %s339_s21 = sshll.u32 %s4082_s7, 4  ;;  %s325_s8 = int_to_ptr.vmem [resolvable:$true] %s324_s8  ;;  %s340_s21 = int_to_ptr.hbm [resolvable:$true] %s339_s21 }
  0x2e   : > { %2696 = dma.hbm_to_vmem [thread:$0]  (!%p3270_p7), %s323_s30, 512, %s325_s8, [#allocation13], %s4112_s9, %s4112_s9, %s4111_s25  }
  0x2f   : > { %s3147_s18 = smov [#allocation15]   ;;  %408 = sbr.rel (%p3259_p5) target bundleno = 1505 (0x5e1), region = 56 }
  0x30   : > { %s341_s22 = sshll.u32 %s3147_s18, 4  ;;  %s342_s22 = int_to_ptr.vmem [resolvable:$true] %s341_s22 }
  0x31   : > { %2699 = dma.hbm_to_vmem [thread:$0]  (!%p3270_p7), %s340_s21, 512, %s342_s22, [#allocation16], %s4112_s9, %s4112_s9, %s4111_s25  }
  0x32   : > { %2706 = dma.hbm_to_vmem [thread:$0]  (!%p3306_p0), %s395_s28, 256, %s397_s1, %s3313_s13, %s3144_s24, %s4112_s9, %s4111_s25  }
  0x34   : > { %3098 = dma.done.wait (%p87_p1), [#allocation7], 256  }
  0x35   : > { %3100 = vsyncadd (%p87_p1), [#allocation7], 4294967040  ;;  %s415_s2 = sand.u32 1, %s3247_s15   ;;  %s417_s14 = sand.u32 1, %s3123_s10  }
  0x36   : > { %s3359_s23 = sshll.u32 %s417_s14, 4  ;;  %s416_s26 = scalar_lea.sflag [#allocation10], %s415_s2 }
  0x37   : > { %s419_s29 = scalar_lea.vmem [#allocation9], %s3359_s23 }
  0x38   : > { %3102 = dma.done.wait (%p3255_p4), %s416_s26, 512  }
  0x39   : > { %3104 = vsyncadd (%p3255_p4), %s416_s26, 4294966784  ;;  %s429_s1 = scalar_lea.vmem [#allocation11], %s3359_s23 }
  0x3a   : > { %3106 = dma.done.wait (%p87_p1), [#allocation13], 1024  }
  0x3b   : > { %3108 = vsyncadd (%p87_p1), [#allocation13], 4294966272 }
  0x3c   : > { %3110 = dma.done.wait (%p87_p1), [#allocation16], 512  }
  0x3d   : > { %3112 = vsyncadd (%p87_p1), [#allocation16], 4294966784  ;;  %p2623_p2 = scmp.ne.s32.totalorder %s3131_s12, 0 }
  0x3e   : > { %s3148_s17 = smov (!%p2623_p2), 104   ;;  %s3149_s24 = smov (!%p2623_p2), 120  }
  0x3f   : > { %487 = sbr.rel (%p2623_p2) target bundleno = 361 (0x169), region = 84  ;;  %s3150_s25 = smov (!%p2623_p2), 112  }
  0x44   : > { %v493_v0 = vld [vmem:[#allocation12 + $0x18] sm:$0xff]  ;;  %v492_v1 = vld [vmem:[#allocation12 + $0x10] sm:$0xff]  ;;  %v491_v2 = vld [vmem:[#allocation12 + $0x8] sm:$0xff]  ;;  %vm498_vm0 = vcmask 261120   ;;  %vm778_vm1 = vcmask 7168   ;;  %v3151_v11 = vmov -inf  }
  0x45   : > { %517 = vmatpush.msra.mxu0 %v493_v0  ;;  %2659 = vmatpush.msra.mxu1 %v493_v0  ;;  %v490_v3 = vld [vmem:[#allocation12] sm:$0xff]  ;;  %v488_v4 = vld [vmem:[#allocation6] sm:$0xff]  ;;  %v489_v5 = vld [vmem:[#allocation6 + $0x8] sm:$0xff]  ;;  %779 = vst.msk [vmem:[#allocation3] sm:$0xff] %vm778_vm1, %v3151_v11  ;;  %v3152_v12 = vmov 0.0   ;;  %vm769_vm2 = vcmask 64512  }
  0x46   : > { %v2793_v6 = vld [vmem:[%s4079_s4] ss:$0 sm:$0xff]  ;;  %780 = vst.msk [vmem:[#allocation3 + $0x8] sm:$0xff] %vm778_vm1, %v3151_v11  ;;  %v3153_v14 = vmov 1983009808   ;;  %vm549_vm3 = vcmask 1047556  }
  0x47   : > { %518 = vmatpush.msra.mxu0 %v492_v1  ;;  %2660 = vmatpush.msra.mxu1 %v492_v1  ;;  %781 = vst.msk [vmem:[#allocation3 + $0x10] sm:$0xff] %vm778_vm1, %v3151_v11  ;;  %v554_v15 = vunpack.c.l.s4 %v3153_v14  ;;  %v3154_v19 = vmov 1934713408  }
  0x48   : > { %782 = vst.msk [vmem:[#allocation3 + $0x18] sm:$0xff] %vm778_vm1, %v3151_v11  ;;  %v578_v20 = vunpack.c.l.s4 %v3154_v19 }
  0x49   : > { %519 = vmatpush.msra.mxu0 %v491_v2  ;;  %2661 = vmatpush.msra.mxu1 %v491_v2  ;;  %783 = vst.msk [vmem:[#allocation3 + $0x20] sm:$0xff] %vm778_vm1, %v3151_v11  ;;  %v3412_v16 = vunpack.c.0.s8 %v554_v15 }
  0x4a   : > { %784 = vst.msk [vmem:[#allocation3 + $0x28] sm:$0xff] %vm778_vm1, %v3151_v11  ;;  %v3422_v33 = vunpack.c.0.s8 %v578_v20 }
  0x4b   : > { %520 = vmatpush.msra.mxu0 %v490_v3  ;;  %2662 = vmatpush.msra.mxu1 %v490_v3  ;;  %785 = vst.msk [vmem:[#allocation3 + $0x30] sm:$0xff] %vm778_vm1, %v3151_v11 }
  0x4c   : > { %2624 = vmatmul.msk.f32.vlgmr.msra.gmra.mxu0 %vm498_vm0, %v488_v4  ;;  %2625 = vmatmul.msk.f32.vlgmr.msra.gmra.mxu1 %vm498_vm0, %v489_v5  ;;  %786 = vst.msk [vmem:[#allocation3 + $0x38] sm:$0xff] %vm778_vm1, %v3151_v11 }
  0x4d   : > { %787 = vst.msk [vmem:[#allocation4] sm:$0xff] %vm778_vm1, %v3152_v12 }
  0x4e   : > { %788 = vst.msk [vmem:[#allocation4 + $0x8] sm:$0xff] %vm778_vm1, %v3152_v12 }
  0x4f   : > { %789 = vst.msk [vmem:[#allocation4 + $0x10] sm:$0xff] %vm778_vm1, %v3152_v12 }
  0x50   : > { %790 = vst.msk [vmem:[#allocation4 + $0x18] sm:$0xff] %vm778_vm1, %v3152_v12 }
  0x51   : > { %791 = vst.msk [vmem:[#allocation4 + $0x20] sm:$0xff] %vm778_vm1, %v3152_v12 }
  0x52   : > { %792 = vst.msk [vmem:[#allocation4 + $0x28] sm:$0xff] %vm778_vm1, %v3152_v12 }
  0x53   : > { %793 = vst.msk [vmem:[#allocation4 + $0x30] sm:$0xff] %vm778_vm1, %v3152_v12 }
  0x54   : > { %794 = vst.msk [vmem:[#allocation4 + $0x38] sm:$0xff] %vm778_vm1, %v3152_v12 }
  0x55   : > { %795 = vst.msk [vmem:[#allocation5] sm:$0xff] %vm769_vm2, %v3152_v12 }
  0x56   : > { %796 = vst.msk [vmem:[#allocation5 + $0x8] sm:$0xff] %vm769_vm2, %v3152_v12 }
  0x57   : > { %797 = vst.msk [vmem:[#allocation5 + $0x10] sm:$0xff] %vm769_vm2, %v3152_v12 }
  0x58   : > { %798 = vst.msk [vmem:[#allocation5 + $0x18] sm:$0xff] %vm769_vm2, %v3152_v12 }
  0x59   : > { %799 = vst.msk [vmem:[#allocation5 + $0x20] sm:$0xff] %vm769_vm2, %v3152_v12 }
  0x5a   : > { %800 = vst.msk [vmem:[#allocation5 + $0x28] sm:$0xff] %vm769_vm2, %v3152_v12 }
  0x5b   : > { %801 = vst.msk [vmem:[#allocation5 + $0x30] sm:$0xff] %vm769_vm2, %v3152_v12 }
  0x5c   : > { %802 = vst.msk [vmem:[#allocation5 + $0x38] sm:$0xff] %vm769_vm2, %v3152_v12 }
  0xc9   : > { %v522_v7 = vpop.f32.mrf.mxu0  ;;  %v525_v9 = vpop.f32.mrf.mxu1 }
  0xca   : > { %v3379_v8 = vadd.f32 %v2793_v6, %v522_v7  ;;  %v3384_v10 = vadd.f32 %v2793_v6, %v525_v9 }
  0xcc   : > { %542 = vrot.lane.b32.xlu2 %v3379_v8, %s3148_s17  ;;  %530 = vrot.lane.b32.xlu1 %v3379_v8, %s3149_s24  ;;  %v551_v21 = vrot.slane %v3379_v8, 4  ;;  %v607_v46 = vrot.slane %v3384_v10, 4 }
  0xcd   : > { %536 = vrot.lane.b32.xlu0 %v3379_v8, %s3150_s25 }
  0xd4   : > { %544 = vrot.lane.b32.xlu2 %v3384_v10, %s3148_s17  ;;  %532 = vrot.lane.b32.xlu1 %v3384_v10, %s3149_s24 }
  0xd5   : > { %538 = vrot.lane.b32.xlu0 %v3384_v10, %s3150_s25 }
 0x126   : > { %v543_v13 = vpop.permute.xlu2 %542 }
 0x127   : > { %v561_v17 = vrot.slane %v543_v13, 4 }
 0x12e   : > { %v545_v30 = vpop.permute.xlu2 %544 }
 0x12f   : > { %v617_v38 = vrot.slane %v545_v30, 4 }
 0x13e   : > { %v531_v18 = vpop.permute.xlu1 %530 }
 0x13f   : > { %v562_v22 = vsel %vm549_vm3, %v561_v17, %v531_v18  ;;  %v563_v23 = vrot.slane %v531_v18, 4  ;;  %v537_v24 = vpop.permute.xlu0 %536 }
 0x140   : > { %v568_v25 = vperm.slane %v562_v22, %v3412_v16  ;;  %v548_v26 = vrot.slane %v537_v24, 4  ;;  %v552_v27 = vsel %vm549_vm3, %v537_v24, %v551_v21 }
 0x141   : > { %v564_v28 = vsel %vm549_vm3, %v543_v13, %v563_v23  ;;  %v560_v29 = vperm.slane %v552_v27, %v3412_v16 }
 0x142   : > { %v572_v31 = vperm.slane %v564_v28, %v3412_v16  ;;  %v573_v32 = vrot.slane %v568_v25, 4  ;;  %v550_v34 = vsel %vm549_vm3, %v548_v26, %v3379_v8 }
 0x143   : > { %v556_v35 = vperm.slane %v550_v34, %v3412_v16  ;;  %v587_v36 = vrot.slane %v560_v29, 4 }
 0x144   : > { %v585_v37 = vrot.slane %v572_v31, 4 }
 0x145   : > { %v574_v39 = vsel %vm549_vm3, %v573_v32, %v556_v35  ;;  %v575_v40 = vrot.slane %v556_v35, 4  ;;  %v588_v41 = vsel %vm549_vm3, %v572_v31, %v587_v36 }
 0x146   : > { %v580_v42 = vperm.slane %v574_v39, %v3422_v33  ;;  %v586_v43 = vsel %vm549_vm3, %v585_v37, %v560_v29  ;;  %v596_v44 = vperm.slane %v588_v41, %v3422_v33  ;;  %v533_v45 = vpop.permute.xlu1 %532 }
 0x147   : > { %v576_v47 = vsel %vm549_vm3, %v568_v25, %v575_v40  ;;  %v592_v48 = vperm.slane %v586_v43, %v3422_v33  ;;  %v618_v49 = vsel %vm549_vm3, %v617_v38, %v533_v45  ;;  %v619_v50 = vrot.slane %v533_v45, 4  ;;  %v539_v51 = vpop.permute.xlu0 %538 }
 0x148   : > { %v584_v52 = vperm.slane %v576_v47, %v3422_v33  ;;  %v597_v53 = vrot.slane %v580_v42, 4  ;;  %v603_v54 = vrot.slane %v596_v44, 4  ;;  %v624_v55 = vperm.slane %v618_v49, %v3412_v16 }
 0x149   : > { %v601_v56 = vrot.slane %v592_v48, 4  ;;  %v620_v57 = vsel %vm549_vm3, %v545_v30, %v619_v50  ;;  %v605_v58 = vrot.slane %v539_v51, 4  ;;  %v608_v59 = vsel %vm549_vm3, %v539_v51, %v607_v46 }
 0x14a   : > { %v598_v60 = vsel %vm549_vm3, 0.0, %v597_v53  ;;  %v599_v61 = vrot.slane %v584_v52, 4  ;;  %v604_v62 = vsel %vm549_vm3, 0.0, %v603_v54  ;;  %v672_v63 = vsel %vm549_vm3, %v603_v54, %v592_v48 }
 0x14b   : > { %v602_v0 = vsel %vm549_vm3, 0.0, %v601_v56  ;;  %v676_v1 = vperm.slane %v672_v63, %v3412_v16  ;;  %v677_v2 = vrot.slane %v604_v62, 4  ;;  %v628_v3 = vperm.slane %v620_v57, %v3412_v16 }
 0x14c   : > { %v600_v4 = vsel %vm549_vm3, 0.0, %v599_v61  ;;  %v661_v5 = vsel %vm549_vm3, %v599_v61, %v580_v42  ;;  %v629_v6 = vrot.slane %v624_v55, 4  ;;  %v606_v7 = vsel %vm549_vm3, %v605_v58, %v3384_v10 }
 0x14d   : > { %v665_v8 = vperm.slane %v661_v5, %v3412_v16  ;;  %v666_v9 = vrot.slane %v600_v4, 4  ;;  %v678_v11 = vsel %vm549_vm3, %v677_v2, %v602_v0  ;;  %v697_v12 = vrot.slane %v676_v1, 4 }
 0x14e   : > { %v682_v13 = vperm.slane %v678_v11, %v3412_v16  ;;  %v641_v14 = vrot.slane %v628_v3, 4  ;;  %v612_v15 = vperm.slane %v606_v7, %v3412_v16  ;;  %v616_v17 = vperm.slane %v608_v59, %v3412_v16 }
 0x14f   : > { %v667_v18 = vsel %vm549_vm3, %v666_v9, %v598_v60  ;;  %v685_v19 = vrot.slane %v665_v8, 4 }
 0x150   : > { %v671_v20 = vperm.slane %v667_v18, %v3412_v16  ;;  %v695_v21 = vrot.slane %v682_v13, 4  ;;  %v698_v10 = vsel %vm549_vm3, %v682_v13, %v697_v12  ;;  %v630_v22 = vsel %vm549_vm3, %v629_v6, %v612_v15 }
 0x151   : > { %v706_v23 = vperm.slane %v698_v10, %v3422_v33  ;;  %v631_v24 = vrot.slane %v612_v15, 4  ;;  %v636_v25 = vperm.slane %v630_v22, %v3422_v33  ;;  %v642_v26 = vsel %vm549_vm3, %v641_v14, %v616_v17 }
 0x152   : > { %v683_v27 = vrot.slane %v671_v20, 4  ;;  %v686_v28 = vsel %vm549_vm3, %v671_v20, %v685_v19  ;;  %v696_v29 = vsel %vm549_vm3, %v695_v21, %v676_v1  ;;  %v643_v30 = vrot.slane %v616_v17, 4 }
 0x153   : > { %v694_v31 = vperm.slane %v686_v28, %v3422_v33  ;;  %v702_v32 = vperm.slane %v696_v29, %v3422_v33  ;;  %v711_v34 = vrot.slane %v706_v23, 4  ;;  %v632_v35 = vsel %vm549_vm3, %v624_v55, %v631_v24 }
 0x154   : > { %v684_v36 = vsel %vm549_vm3, %v683_v27, %v665_v8  ;;  %v640_v37 = vperm.slane %v632_v35, %v3422_v33  ;;  %v644_v38 = vsel %vm549_vm3, %v628_v3, %v643_v30  ;;  %v648_v39 = vperm.slane %v642_v26, %v3422_v33 }
 0x155   : > { %v690_v40 = vperm.slane %v684_v36, %v3422_v33  ;;  %v707_v41 = vrot.slane %v702_v32, 4  ;;  %v712_v42 = vsel %vm549_vm3, %v711_v34, %v694_v31  ;;  %v713_v43 = vrot.slane %v694_v31, 4 }
 0x156   : > { %772 = vst.msk [vmem:[#allocation2 + $0x10] sm:$0xff] %vm769_vm2, %v712_v42  ;;  %v652_v44 = vperm.slane %v644_v38, %v3422_v33  ;;  %v653_v45 = vrot.slane %v636_v25, 4  ;;  %v655_v46 = vrot.slane %v640_v37, 4  ;;  %v657_v47 = vrot.slane %v648_v39, 4 }
 0x157   : > { %v708_v48 = vsel %vm549_vm3, %v707_v41, %v690_v40  ;;  %v709_v49 = vrot.slane %v690_v40, 4  ;;  %v714_v50 = vsel %vm549_vm3, %v706_v23, %v713_v43 }
 0x158   : > { %770 = vst.msk [vmem:[#allocation2] sm:$0xff] %vm769_vm2, %v708_v48  ;;  %v656_v51 = vsel %vm549_vm3, 0.0, %v655_v46  ;;  %v659_v52 = vrot.slane %v652_v44, 4  ;;  %v654_v54 = vsel %vm549_vm3, 0.0, %v653_v45  ;;  %v715_v55 = vsel %vm549_vm3, %v655_v46, %v636_v25 }
 0x159   : > { %v710_v53 = vsel %vm549_vm3, %v702_v32, %v709_v49  ;;  %773 = vst.msk [vmem:[#allocation2 + $0x18] sm:$0xff] %vm769_vm2, %v714_v50  ;;  %v720_v56 = vrot.slane %v656_v51, 4  ;;  %v658_v57 = vsel %vm549_vm3, 0.0, %v657_v47  ;;  %v719_v59 = vperm.slane %v715_v55, %v3412_v16 }
 0x15a   : > { %771 = vst.msk [vmem:[#allocation2 + $0x8] sm:$0xff] %vm769_vm2, %v710_v53  ;;  %v660_v58 = vsel %vm549_vm3, 0.0, %v659_v52  ;;  %v726_v60 = vsel %vm549_vm3, %v659_v52, %v648_v39 }
 0x15b   : > { %v721_v61 = vsel %vm549_vm3, %v720_v56, %v654_v54  ;;  %v730_v62 = vperm.slane %v726_v60, %v3412_v16  ;;  %v731_v63 = vrot.slane %v660_v58, 4  ;;  %v739_v1 = vrot.slane %v719_v59, 4 }
 0x15c   : > { %v725_v0 = vperm.slane %v721_v61, %v3412_v16 }
 0x15d   : > { %v732_v2 = vsel %vm549_vm3, %v731_v63, %v658_v57  ;;  %v751_v3 = vrot.slane %v730_v62, 4 }
 0x15e   : > { %v736_v4 = vperm.slane %v732_v2, %v3412_v16  ;;  %v737_v5 = vrot.slane %v725_v0, 4  ;;  %v740_v6 = vsel %vm549_vm3, %v725_v0, %v739_v1 }
 0x15f   : > { %v748_v7 = vperm.slane %v740_v6, %v3422_v33 }
 0x160   : > { %v738_v8 = vsel %vm549_vm3, %v737_v5, %v719_v59  ;;  %v749_v9 = vrot.slane %v736_v4, 4  ;;  %v752_v11 = vsel %vm549_vm3, %v736_v4, %v751_v3 }
 0x161   : > { %v744_v12 = vperm.slane %v738_v8, %v3422_v33  ;;  %v760_v13 = vperm.slane %v752_v11, %v3422_v33  ;;  %v767_v14 = vrot.slane %v748_v7, 4 }
 0x162   : > { %v750_v15 = vsel %vm549_vm3, %v749_v9, %v730_v62 }
 0x163   : > { %v756_v17 = vperm.slane %v750_v15, %v3422_v33  ;;  %v763_v16 = vrot.slane %v744_v12, 4  ;;  %v765_v18 = vrot.slane %v760_v13, 4  ;;  %v768_v19 = vsel %vm549_vm3, %v760_v13, %v767_v14 }
 0x164   : > { %777 = vst.msk [vmem:[#allocation2 + $0x38] sm:$0xff] %vm769_vm2, %v768_v19 }
 0x165   : > { %v761_v20 = vrot.slane %v756_v17, 4  ;;  %v764_v21 = vsel %vm549_vm3, %v756_v17, %v763_v16  ;;  %v766_v10 = vsel %vm549_vm3, %v765_v18, %v748_v7 }
 0x166   : > { %775 = vst.msk [vmem:[#allocation2 + $0x28] sm:$0xff] %vm769_vm2, %v764_v21 }
 0x167   : > { %v762_v22 = vsel %vm549_vm3, %v761_v20, %v744_v12  ;;  %776 = vst.msk [vmem:[#allocation2 + $0x30] sm:$0xff] %vm769_vm2, %v766_v10 }
 0x168   : > { %774 = vst.msk [vmem:[#allocation2 + $0x20] sm:$0xff] %vm769_vm2, %v762_v22 }
 0x169 PF: > { %v810_v33 = vld [vmem:[#allocation14 + $0x18] sm:$0xff]  ;;  %v809_v23 = vld [vmem:[#allocation14 + $0x10] sm:$0xff]  ;;  %v808_v24 = vld [vmem:[#allocation14 + $0x8] sm:$0xff]  ;;  %vm815_vm4 = vcmask 261120   ;;  %s3155_s19 = smov 104   ;;  %s3156_s30 = smov 112  }
 0x16a   : > { %834 = vmatpush.msra.mxu0 %v810_v33  ;;  %v848_v25 = vld [vmem:[#allocation15 + $0x18] sm:$0xff]  ;;  %v847_v26 = vld [vmem:[#allocation15 + $0x10] sm:$0xff]  ;;  %v807_v27 = vld [vmem:[#allocation14] sm:$0xff]  ;;  %s3157_s27 = smov 120   ;;  %s4113_s11 = sld [smem:[#allocation31_spill]]  ;;  %vm903_vm5 = vcmask 1047556  }
 0x16b   : > { %871 = vmatpush.msra.mxu1 %v848_v25  ;;  %v846_v28 = vld [vmem:[#allocation15 + $0x8] sm:$0xff]  ;;  %v803_v29 = vld [vmem:[%s419_s29] sm:$0xff]  ;;  %v3158_v48 = vmov 1983009808   ;;  %v3159_v62 = vmov 1934713408  }
 0x16c   : > { %835 = vmatpush.msra.mxu0 %v809_v23  ;;  %v845_v30 = vld [vmem:[#allocation15] sm:$0xff]  ;;  %v804_v32 = vld [vmem:[%s419_s29 + $0x8] sm:$0xff]  ;;  %v2812_v35 = vld [vmem:[%s4081_s6] ss:$0 sm:$0xff]  ;;  %v908_v49 = vunpack.c.l.s4 %v3158_v48  ;;  %v932_v63 = vunpack.c.l.s4 %v3159_v62  ;;  %vm1371_vm6 = vcmask 64512   ;;  %vm1756_vm7 = vcmask 7168  }
 0x16d   : > { %872 = vmatpush.msra.mxu1 %v847_v26  ;;  %v805_v31 = vld [vmem:[%s429_s1] sm:$0xff]  ;;  %v806_v34 = vld [vmem:[%s429_s1 + $0x8] sm:$0xff]  ;;  %p2654_p1 = scmp.ne.s32.totalorder %s3131_s12, 1 }
 0x16e   : > { %836 = vmatpush.msra.mxu0 %v808_v24  ;;  %v3533_v54 = vunpack.c.0.s8 %v908_v49  ;;  %v3543_v7 = vunpack.c.0.s8 %v932_v63  ;;  %s3162_s12 = smov (!%p2654_p1), 8   ;;  %s3163_s20 = smov (!%p2654_p1), 16  }
 0x16f   : > { %873 = vmatpush.msra.mxu1 %v846_v28  ;;  %s3164_s21 = smov (!%p2654_p1), 24  }
 0x170   : > { %837 = vmatpush.msra.mxu0 %v807_v27  ;;  %v2813_v41 = vld [vmem:[%s4113_s11] ss:$0 sm:$0xff] }
 0x171   : > { %2626 = vmatmul.msk.f32.vlgmr.msra.gmra.mxu0 %vm815_vm4, %v803_v29  ;;  %874 = vmatpush.msra.mxu1 %v845_v30 }
 0x172   : > { %2628 = vmatmul.msk.f32.vlgmr.msra.gmra.mxu1 %vm815_vm4, %v805_v31 }
 0x179   : > { %2627 = vmatmul.msk.f32.gmra.mxu0 %vm815_vm4, %v804_v32 }
 0x17a   : > { %2629 = vmatmul.msk.f32.gmra.mxu1 %vm815_vm4, %v806_v34 }
 0x1ee   : > { %v839_v36 = vpop.f32.mrf.mxu0 }
 0x1ef   : > { %v840_v37 = vadd.f32 %v2812_v35, %v839_v36  ;;  %v876_v40 = vpop.f32.mrf.mxu1 }
 0x1f0   : > { %v3527_v42 = vadd.f32 %v2813_v41, %v876_v40 }
 0x1f1   : > { %896 = vrot.lane.b32.xlu1 %v840_v37, %s3155_s19  ;;  %890 = vrot.lane.b32.xlu0 %v840_v37, %s3156_s30  ;;  %v905_v57 = vrot.slane %v840_v37, 4 }
 0x1f6   : > { %v842_v38 = vpop.f32.mrf.mxu0 }
 0x1f7   : > { %v843_v39 = vadd.f32 %v2812_v35, %v842_v38  ;;  %v879_v43 = vpop.f32.mrf.mxu1 }
 0x1f8   : > { %v3529_v44 = vadd.f32 %v2813_v41, %v879_v43 }
 0x1f9   : > { %886 = vrot.lane.b32.xlu2 %v843_v39, %s3157_s27  ;;  %892 = vrot.lane.b32.xlu1 %v843_v39, %s3156_s30  ;;  %v961_v3 = vrot.slane %v843_v39, 4 }
 0x1fa   : > { %884 = vrot.lane.b32.xlu0 %v840_v37, %s3157_s27  ;;  %v2794_v45 = vpack.i.bf16 %v3529_v44, %v3527_v42 }
 0x201   : > { %898 = vrot.lane.b32.xlu2 %v843_v39, %s3155_s19  ;;  %2795 = vrot.lane.b32.xlu1 %v2794_v45, %s3156_s30 }
 0x202   : > { %2805 = vrot.lane.b32.xlu0 %v2794_v45, %s3155_s19 }
 0x209   : > { %2800 = vrot.lane.b32.xlu2 %v2794_v45, %s3157_s27 }
 0x253   : > { %v887_v46 = vpop.permute.xlu2 %886 }
 0x254   : > { %v973_v50 = vrot.slane %v887_v46, 4 }
 0x25b   : > { %v899_v47 = vpop.permute.xlu2 %898 }
 0x25c   : > { %v971_v51 = vrot.slane %v899_v47, 4  ;;  %v974_v56 = vsel %vm903_vm5, %v899_v47, %v973_v50 }
 0x25d   : > { %v982_v61 = vperm.slane %v974_v56, %v3533_v54 }
 0x25e   : > { %v972_v58 = vsel %vm903_vm5, %v971_v51, %v887_v46 }
 0x25f   : > { %v978_v0 = vperm.slane %v972_v58, %v3533_v54  ;;  %v995_v6 = vrot.slane %v982_v61, 4 }
 0x261   : > { %v983_v12 = vrot.slane %v978_v0, 4 }
 0x263   : > { %v897_v52 = vpop.permute.xlu1 %896  ;;  %v891_v53 = vpop.permute.xlu0 %890 }
 0x264   : > { %v902_v55 = vrot.slane %v891_v53, 4  ;;  %v906_v60 = vsel %vm903_vm5, %v891_v53, %v905_v57  ;;  %v915_v4 = vrot.slane %v897_v52, 4 }
 0x265   : > { %v914_v2 = vperm.slane %v906_v60, %v3533_v54 }
 0x266   : > { %v904_v59 = vsel %vm903_vm5, %v902_v55, %v840_v37 }
 0x267   : > { %v910_v1 = vperm.slane %v904_v59, %v3533_v54  ;;  %v941_v16 = vrot.slane %v914_v2, 4 }
 0x269   : > { %v929_v17 = vrot.slane %v910_v1, 4 }
 0x26b   : > { %v893_v5 = vpop.permute.xlu1 %892 }
 0x26c   : > { %v959_v8 = vrot.slane %v893_v5, 4  ;;  %v962_v9 = vsel %vm903_vm5, %v893_v5, %v961_v3  ;;  %v885_v11 = vpop.permute.xlu0 %884 }
 0x26d   : > { %v970_v13 = vperm.slane %v962_v9, %v3533_v54  ;;  %v916_v14 = vsel %vm903_vm5, %v915_v4, %v885_v11  ;;  %v917_v15 = vrot.slane %v885_v11, 4 }
 0x26e   : > { %v960_v18 = vsel %vm903_vm5, %v959_v8, %v843_v39  ;;  %v922_v19 = vperm.slane %v916_v14, %v3533_v54 }
 0x26f   : > { %v966_v20 = vperm.slane %v960_v18, %v3533_v54  ;;  %v996_v21 = vsel %vm903_vm5, %v995_v6, %v970_v13  ;;  %v997_v10 = vrot.slane %v970_v13, 4  ;;  %v918_v22 = vsel %vm903_vm5, %v897_v52, %v917_v15 }
 0x270   : > { %v1002_v33 = vperm.slane %v996_v21, %v3543_v7  ;;  %v926_v23 = vperm.slane %v918_v22, %v3533_v54  ;;  %v927_v24 = vrot.slane %v922_v19, 4  ;;  %v930_v25 = vsel %vm903_vm5, %v922_v19, %v929_v17 }
 0x271   : > { %v984_v26 = vsel %vm903_vm5, %v983_v12, %v966_v20  ;;  %v985_v27 = vrot.slane %v966_v20, 4  ;;  %v998_v28 = vsel %vm903_vm5, %v982_v61, %v997_v10  ;;  %v938_v29 = vperm.slane %v930_v25, %v3543_v7 }
 0x272   : > { %v990_v30 = vperm.slane %v984_v26, %v3543_v7  ;;  %v1006_v31 = vperm.slane %v998_v28, %v3543_v7  ;;  %v1011_v32 = vrot.slane %v1002_v33, 4  ;;  %v928_v34 = vsel %vm903_vm5, %v927_v24, %v910_v1 }
 0x273   : > { %v986_v35 = vsel %vm903_vm5, %v978_v0, %v985_v27  ;;  %v934_v36 = vperm.slane %v928_v34, %v3543_v7  ;;  %v939_v37 = vrot.slane %v926_v23, 4  ;;  %v942_v38 = vsel %vm903_vm5, %v926_v23, %v941_v16 }
 0x274   : > { %v994_v39 = vperm.slane %v986_v35, %v3543_v7  ;;  %v1007_v40 = vrot.slane %v990_v30, 4  ;;  %v1012_v41 = vsel %vm903_vm5, 0.0, %v1011_v32  ;;  %v1013_v43 = vrot.slane %v1006_v31, 4 }
 0x275   : > { %v940_v45 = vsel %vm903_vm5, %v939_v37, %v914_v2  ;;  %v950_v46 = vperm.slane %v942_v38, %v3543_v7  ;;  %v951_v47 = vrot.slane %v934_v36, 4  ;;  %v953_v48 = vrot.slane %v938_v29, 4 }
 0x276   : > { %v1009_v49 = vrot.slane %v994_v39, 4  ;;  %v1014_v50 = vsel %vm903_vm5, 0.0, %v1013_v43  ;;  %v1080_v51 = vsel %vm903_vm5, %v1013_v43, %v1002_v33  ;;  %v946_v52 = vperm.slane %v940_v45, %v3543_v7 }
 0x277   : > { %v1084_v53 = vperm.slane %v1080_v51, %v3533_v54  ;;  %v1085_v55 = vrot.slane %v1014_v50, 4  ;;  %v952_v56 = vsel %vm903_vm5, 0.0, %v951_v47  ;;  %v954_v57 = vsel %vm903_vm5, 0.0, %v953_v48 }
 0x278   : > { %v1010_v58 = vsel %vm903_vm5, 0.0, %v1009_v49  ;;  %v955_v59 = vrot.slane %v946_v52, 4  ;;  %v957_v60 = vrot.slane %v950_v46, 4  ;;  %v1015_v61 = vsel %vm903_vm5, %v953_v48, %v934_v36 }
 0x279   : > { %v1086_v62 = vsel %vm903_vm5, %v1085_v55, %v1012_v41  ;;  %v1020_v63 = vrot.slane %v954_v57, 4  ;;  %v1019_v0 = vperm.slane %v1015_v61, %v3533_v54  ;;  %v1008_v1 = vsel %vm903_vm5, 0.0, %v1007_v40 }
 0x27a   : > { %v958_v2 = vsel %vm903_vm5, 0.0, %v957_v60  ;;  %v956_v3 = vsel %vm903_vm5, 0.0, %v955_v59  ;;  %v1026_v4 = vsel %vm903_vm5, %v957_v60, %v946_v52  ;;  %v1069_v5 = vsel %vm903_vm5, %v1009_v49, %v990_v30  ;;  %v1369_v52 = vld [vmem:[#allocation2 + $0x30] sm:$0xff]  ;;  %v1370_v60 = vld [vmem:[#allocation2 + $0x38] sm:$0xff] }
 0x27b   : > { %v1031_v6 = vrot.slane %v958_v2, 4  ;;  %v1021_v8 = vsel %vm903_vm5, %v1020_v63, %v952_v56  ;;  %v1030_v9 = vperm.slane %v1026_v4, %v3533_v54  ;;  %v1073_v11 = vperm.slane %v1069_v5, %v3533_v54  ;;  %v1364_v56 = vld [vmem:[#allocation2 + $0x8] sm:$0xff]  ;;  %v1365_v2 = vld [vmem:[#allocation2 + $0x10] sm:$0xff]  ;;  %v1367_v4 = vld [vmem:[#allocation2 + $0x20] sm:$0xff] }
 0x27c   : > { %v1025_v12 = vperm.slane %v1021_v8, %v3533_v54  ;;  %v1074_v13 = vrot.slane %v1010_v58, 4  ;;  %v1090_v14 = vperm.slane %v1086_v62, %v3533_v54  ;;  %v1105_v15 = vrot.slane %v1084_v53, 4  ;;  %v1363_v62 = vld [vmem:[#allocation2] sm:$0xff]  ;;  %v2796_v8 = vpop.permute.xlu1 %2795 }
 0x27d   : > { %v1032_v17 = vsel %vm903_vm5, %v1031_v6, %v956_v3  ;;  %v1093_v16 = vrot.slane %v1073_v11, 4  ;;  %v1039_v18 = vrot.slane %v1019_v0, 4  ;;  %v1051_v19 = vrot.slane %v1030_v9, 4  ;;  %v1368_v3 = vld [vmem:[#allocation2 + $0x28] sm:$0xff] }
 0x27e   : > { %v1036_v20 = vperm.slane %v1032_v17, %v3533_v54  ;;  %v1037_v21 = vrot.slane %v1025_v12, 4  ;;  %v1075_v10 = vsel %vm903_vm5, %v1074_v13, %v1008_v1  ;;  %v1106_v22 = vsel %vm903_vm5, %v1090_v14, %v1105_v15  ;;  %v1366_v1 = vld [vmem:[#allocation2 + $0x18] sm:$0xff]  ;;  %v2801_v13 = vpop.permute.xlu2 %2800 }
 0x27f   : > { %v1079_v33 = vperm.slane %v1075_v10, %v3533_v54  ;;  %v1114_v23 = vperm.slane %v1106_v22, %v3543_v7  ;;  %v1040_v24 = vsel %vm903_vm5, %v1025_v12, %v1039_v18  ;;  %v1103_v25 = vrot.slane %v1090_v14, 4  ;;  %v2806_v12 = vpop.permute.xlu0 %2805 }
 0x280   : > { %v1038_v26 = vsel %vm903_vm5, %v1037_v21, %v1019_v0  ;;  %v1049_v27 = vrot.slane %v1036_v20, 4  ;;  %v1048_v28 = vperm.slane %v1040_v24, %v3543_v7  ;;  %v1052_v29 = vsel %vm903_vm5, %v1036_v20, %v1051_v19 }
 0x281   : > { %v1044_v30 = vperm.slane %v1038_v26, %v3543_v7  ;;  %v1091_v31 = vrot.slane %v1079_v33, 4  ;;  %v1094_v32 = vsel %vm903_vm5, %v1079_v33, %v1093_v16  ;;  %v1119_v34 = vrot.slane %v1114_v23, 4 }
 0x282   : > { %v1050_v35 = vsel %vm903_vm5, %v1049_v27, %v1030_v9  ;;  %v1102_v36 = vperm.slane %v1094_v32, %v3543_v7  ;;  %v1060_v37 = vperm.slane %v1052_v29, %v3543_v7  ;;  %v1067_v38 = vrot.slane %v1048_v28, 4 }
 0x283   : > { %v1056_v39 = vperm.slane %v1050_v35, %v3543_v7  ;;  %v1063_v40 = vrot.slane %v1044_v30, 4  ;;  %v1092_v41 = vsel %vm903_vm5, %v1091_v31, %v1073_v11  ;;  %v1104_v43 = vsel %vm903_vm5, %v1103_v25, %v1084_v53 }
 0x284   : > { %v1120_v45 = vsel %vm903_vm5, %v1119_v34, %v1102_v36  ;;  %v1121_v46 = vrot.slane %v1102_v36, 4  ;;  %v1065_v47 = vrot.slane %v1060_v37, 4  ;;  %v1098_v50 = vperm.slane %v1092_v41, %v3543_v7 }
 0x285   : > { %v1064_v48 = vsel %vm903_vm5, %v1056_v39, %v1063_v40  ;;  %2642 = vmatpush.xpose.msk.msrb.mxu0 %vm1371_vm6, %v1120_v45  ;;  %v1061_v49 = vrot.slane %v1056_v39, 4  ;;  %v1110_v51 = vperm.slane %v1104_v43, %v3543_v7  ;;  %v1068_v55 = vsel %vm903_vm5, %v1060_v37, %v1067_v38 }
 0x286   : > { %2632 = vmatpush.xpose.msk.msra.mxu3 %vm1371_vm6, %v1064_v48  ;;  %v1122_v53 = vsel %vm903_vm5, %v1114_v23, %v1121_v46  ;;  %v1117_v58 = vrot.slane %v1098_v50, 4  ;;  %v1066_v61 = vsel %vm903_vm5, %v1065_v47, %v1048_v28  ;;  %v1145_v5 = vrot.slane %v3527_v42, 4 }
 0x287   : > { %v1062_v57 = vsel %vm903_vm5, %v1061_v49, %v1044_v30  ;;  %2644 = vmatpush.xpose.msk.msrb.mxu1 %vm1371_vm6, %v1122_v53  ;;  %v1115_v59 = vrot.slane %v1110_v51, 4  ;;  %v1201_v6 = vrot.slane %v3529_v44, 4  ;;  %v2798_v9 = vunpack.i.h.bf16 %v2796_v8 }
 0x288   : > { %2630 = vmatpush.xpose.msk.msra.mxu2 %vm1371_vm6, %v1062_v57  ;;  %2643 = vmatmul.msk.f32.vlgmr.msrb.gmra.mxu0 %vm1371_vm6, %v1369_v52  ;;  %v1118_v63 = vsel %vm903_vm5, %v1110_v51, %v1117_v58  ;;  %v2797_v11 = vunpack.i.l.bf16 %v2796_v8  ;;  %v2803_v18 = vunpack.i.h.bf16 %v2801_v13  ;;  %v2802_v19 = vunpack.i.l.bf16 %v2801_v13 }
 0x289   : > { %2633 = vmatmul.msk.f32.vlgmr.msra.gmra.mxu3 %vm1371_vm6, %v1364_v56  ;;  %v1116_v0 = vsel %vm903_vm5, %v1115_v59, %v1098_v50  ;;  %v1199_v14 = vrot.slane %v2798_v9, 4  ;;  %v1202_v15 = vsel %vm903_vm5, %v2798_v9, %v1201_v6  ;;  %v2808_v22 = vunpack.i.h.bf16 %v2806_v12 }
 0x28a   : > { %2636 = vmatpush.xpose.msk.msrb.mxu3 %vm1371_vm6, %v1068_v55  ;;  %2645 = vmatmul.msk.f32.vlgmr.msrb.gmra.mxu1 %vm1371_vm6, %v1370_v60  ;;  %v1143_v17 = vrot.slane %v2797_v11, 4  ;;  %v1146_v16 = vsel %vm903_vm5, %v2797_v11, %v1145_v5  ;;  %v1210_v20 = vperm.slane %v1202_v15, %v3533_v54  ;;  %v2807_v33 = vunpack.i.l.bf16 %v2806_v12 }
 0x28b   : > { %2631 = vmatmul.msk.f32.vlgmr.msra.gmra.mxu2 %vm1371_vm6, %v1363_v62  ;;  %v1200_v21 = vsel %vm903_vm5, %v1199_v14, %v3529_v44  ;;  %v1213_v23 = vrot.slane %v2803_v18, 4  ;;  %v1157_v24 = vrot.slane %v2802_v19, 4  ;;  %v1154_v26 = vperm.slane %v1146_v16, %v3533_v54 }
 0x28c   : > { %2634 = vmatpush.xpose.msk.msrb.mxu2 %vm1371_vm6, %v1066_v61  ;;  %v1144_v10 = vsel %vm903_vm5, %v1143_v17, %v3527_v42  ;;  %v1206_v25 = vperm.slane %v1200_v21, %v3533_v54  ;;  %v1237_v27 = vrot.slane %v1210_v20, 4  ;;  %v1211_v29 = vrot.slane %v2808_v22, 4 }
 0x28d   : > { %v1150_v28 = vperm.slane %v1144_v10, %v3533_v54  ;;  %v1155_v30 = vrot.slane %v2807_v33, 4  ;;  %v1214_v32 = vsel %vm903_vm5, %v2808_v22, %v1213_v23  ;;  %v1158_v44 = vsel %vm903_vm5, %v2807_v33, %v1157_v24 }
 0x28e   : > { %2640 = vmatpush.xpose.msk.msra.mxu3 %vm1371_vm6, %v1118_v63  ;;  %v1225_v31 = vrot.slane %v1206_v25, 4  ;;  %v1212_v42 = vsel %vm903_vm5, %v1211_v29, %v2803_v18  ;;  %v1222_v35 = vperm.slane %v1214_v32, %v3533_v54  ;;  %v1166_v39 = vperm.slane %v1158_v44, %v3533_v54 }
 0x28f   : > { %v1169_v34 = vrot.slane %v1150_v28, 4  ;;  %v1156_v36 = vsel %vm903_vm5, %v1155_v30, %v2802_v19  ;;  %v1218_v37 = vperm.slane %v1212_v42, %v3533_v54  ;;  %v1181_v40 = vrot.slane %v1154_v26, 4 }
 0x290   : > { %2638 = vmatpush.xpose.msk.msra.mxu2 %vm1371_vm6, %v1116_v0  ;;  %v1162_v38 = vperm.slane %v1156_v36, %v3533_v54  ;;  %v1235_v41 = vrot.slane %v1222_v35, 4  ;;  %v1238_v43 = vsel %vm903_vm5, %v1222_v35, %v1237_v27  ;;  %v1179_v52 = vrot.slane %v1166_v39, 4 }
 0x291   : > { %2637 = vmatmul.msk.f32.vlgmr.msrb.gmra.mxu3 %vm1371_vm6, %v1366_v1  ;;  %v1223_v45 = vrot.slane %v1218_v37, 4  ;;  %v1226_v46 = vsel %vm903_vm5, %v1218_v37, %v1225_v31  ;;  %v1246_v47 = vperm.slane %v1238_v43, %v3543_v7  ;;  %v1182_v1 = vsel %vm903_vm5, %v1166_v39, %v1181_v40 }
 0x292   : > { %v1167_v48 = vrot.slane %v1162_v38, 4  ;;  %v1234_v49 = vperm.slane %v1226_v46, %v3543_v7  ;;  %v1236_v50 = vsel %vm903_vm5, %v1235_v41, %v1210_v20  ;;  %v1170_v51 = vsel %vm903_vm5, %v1162_v38, %v1169_v34 }
 0x293   : > { %2635 = vmatmul.msk.f32.vlgmr.msrb.gmra.mxu2 %vm1371_vm6, %v1365_v2  ;;  %v1224_v55 = vsel %vm903_vm5, %v1223_v45, %v1206_v25  ;;  %v1242_v53 = vperm.slane %v1236_v50, %v3543_v7  ;;  %v1253_v56 = vrot.slane %v1246_v47, 4  ;;  %v1178_v61 = vperm.slane %v1170_v51, %v3543_v7 }
 0x294   : > { %v1168_v57 = vsel %vm903_vm5, %v1167_v48, %v1150_v28  ;;  %v1230_v58 = vperm.slane %v1224_v55, %v3543_v7  ;;  %v1249_v59 = vrot.slane %v1234_v49, 4  ;;  %v1180_v0 = vsel %vm903_vm5, %v1179_v52, %v1154_v26 }
 0x295   : > { %v1174_v60 = vperm.slane %v1168_v57, %v3543_v7  ;;  %v1251_v62 = vrot.slane %v1242_v53, 4  ;;  %v1254_v63 = vsel %vm903_vm5, 0.0, %v1253_v56  ;;  %v1186_v5 = vperm.slane %v1180_v0, %v3543_v7 }
 0x296   : > { %v1247_v2 = vrot.slane %v1230_v58, 4  ;;  %v1190_v9 = vperm.slane %v1182_v1, %v3543_v7  ;;  %v1193_v12 = vrot.slane %v1178_v61, 4  ;;  %v1309_v15 = vsel %vm903_vm5, %v1249_v59, %v1230_v58 }
 0x297   : > { %v1252_v6 = vsel %vm903_vm5, 0.0, %v1251_v62  ;;  %v1191_v11 = vrot.slane %v1174_v60, 4  ;;  %v1195_v13 = vrot.slane %v1186_v5, 4  ;;  %v1313_v18 = vperm.slane %v1309_v15, %v3533_v54 }
 0x298   : > { %v1248_v14 = vsel %vm903_vm5, 0.0, %v1247_v2  ;;  %v1197_v17 = vrot.slane %v1190_v9, 4  ;;  %v1194_v20 = vsel %vm903_vm5, 0.0, %v1193_v12  ;;  %v1255_v10 = vsel %vm903_vm5, %v1193_v12, %v1174_v60 }
 0x299   : > { %2641 = vmatmul.msk.f32.vlgmr.msra.gmra.mxu3 %vm1371_vm6, %v1368_v3  ;;  %v1250_v3 = vsel %vm903_vm5, 0.0, %v1249_v59  ;;  %v1192_v16 = vsel %vm903_vm5, 0.0, %v1191_v11  ;;  %v1196_v21 = vsel %vm903_vm5, 0.0, %v1195_v13  ;;  %v1260_v23 = vrot.slane %v1194_v20, 4 }
 0x29a   : > { %v1314_v8 = vrot.slane %v1250_v3, 4  ;;  %v1198_v33 = vsel %vm903_vm5, 0.0, %v1197_v17  ;;  %v1259_v24 = vperm.slane %v1255_v10, %v3533_v54  ;;  %v1266_v25 = vsel %vm903_vm5, %v1197_v17, %v1186_v5 }
 0x29b   : > { %2639 = vmatmul.msk.f32.vlgmr.msra.gmra.mxu2 %vm1371_vm6, %v1367_v4  ;;  %v1325_v4 = vrot.slane %v1254_v63, 4  ;;  %v1271_v26 = vrot.slane %v1198_v33, 4  ;;  %v1270_v27 = vperm.slane %v1266_v25, %v3533_v54  ;;  %v1320_v28 = vsel %vm903_vm5, %v1253_v56, %v1242_v53 }
 0x29c   : > { %v1315_v19 = vsel %vm903_vm5, %v1314_v8, %v1248_v14  ;;  %v1261_v30 = vsel %vm903_vm5, %v1260_v23, %v1192_v16  ;;  %v1279_v31 = vrot.slane %v1259_v24, 4  ;;  %v1324_v32 = vperm.slane %v1320_v28, %v3533_v54 }
 0x29d   : > { %v1319_v22 = vperm.slane %v1315_v19, %v3533_v54  ;;  %v1326_v29 = vsel %vm903_vm5, %v1325_v4, %v1252_v6  ;;  %v1265_v34 = vperm.slane %v1261_v30, %v3533_v54  ;;  %v1272_v42 = vsel %vm903_vm5, %v1271_v26, %v1196_v21 }
 0x29e   : > { %v1330_v44 = vperm.slane %v1326_v29, %v3533_v54  ;;  %v1291_v35 = vrot.slane %v1270_v27, 4  ;;  %v1276_v37 = vperm.slane %v1272_v42, %v3533_v54  ;;  %v1333_v39 = vrot.slane %v1313_v18, 4  ;;  %v1581_v42 = vld [vmem:[#allocation3 + $0x8] sm:$0xff] }
 0x29f   : > { %v1331_v36 = vrot.slane %v1319_v22, 4  ;;  %v1277_v40 = vrot.slane %v1265_v34, 4  ;;  %v1280_v41 = vsel %vm903_vm5, %v1265_v34, %v1279_v31  ;;  %v1345_v45 = vrot.slane %v1324_v32, 4  ;;  %v3749_v31 = vld [vmem:[#allocation3 + $0x30] sm:$0xff] }
 0x2a0   : > { %v1343_v38 = vrot.slane %v1330_v44, 4  ;;  %v1289_v46 = vrot.slane %v1276_v37, 4  ;;  %v1288_v47 = vperm.slane %v1280_v41, %v3543_v7  ;;  %v1292_v48 = vsel %vm903_vm5, %v1276_v37, %v1291_v35  ;;  %v1582_v41 = vld [vmem:[#allocation3 + $0x10] sm:$0xff] }
 0x2a1   : > { %v1332_v43 = vsel %vm903_vm5, %v1331_v36, %v1313_v18  ;;  %v1278_v50 = vsel %vm903_vm5, %v1277_v40, %v1259_v24  ;;  %v1300_v51 = vperm.slane %v1292_v48, %v3543_v7  ;;  %v1334_v55 = vsel %vm903_vm5, %v1319_v22, %v1333_v39  ;;  %v1580_v36 = vld [vmem:[#allocation3] sm:$0xff]  ;;  %v3760_v40 = vld [vmem:[#allocation3 + $0x38] sm:$0xff] }
 0x2a2   : > { %v1338_v49 = vperm.slane %v1332_v43, %v3543_v7  ;;  %v1344_v52 = vsel %vm903_vm5, %v1343_v38, %v1324_v32  ;;  %v1284_v53 = vperm.slane %v1278_v50, %v3543_v7  ;;  %v1290_v56 = vsel %vm903_vm5, %v1289_v46, %v1270_v27  ;;  %v3771_v50 = vld [vmem:[#allocation3 + $0x28] sm:$0xff] }
 0x2a3   : > { %v1307_v57 = vrot.slane %v1288_v47, 4  ;;  %v1350_v58 = vperm.slane %v1344_v52, %v3543_v7  ;;  %v1296_v59 = vperm.slane %v1290_v56, %v3543_v7  ;;  %v1305_v60 = vrot.slane %v1300_v51, 4  ;;  %v1583_v52 = vld [vmem:[#allocation3 + $0x18] sm:$0xff] }
 0x2a4   : > { %v1357_v61 = vrot.slane %v1338_v49, 4  ;;  %v1342_v62 = vperm.slane %v1334_v55, %v3543_v7  ;;  %v1303_v63 = vrot.slane %v1284_v53, 4  ;;  %v1346_v2 = vsel %vm903_vm5, %v1330_v44, %v1345_v45  ;;  %v1584_v55 = vld [vmem:[#allocation3 + $0x20] sm:$0xff] }
 0x2a5   : > { %v1308_v0 = vsel %vm903_vm5, %v1300_v51, %v1307_v57  ;;  %v1355_v1 = vrot.slane %v1350_v58, 4  ;;  %v1301_v3 = vrot.slane %v1296_v59, 4  ;;  %v1306_v4 = vsel %vm903_vm5, %v1305_v60, %v1288_v47 }
 0x2a6   : > { %1908 = vmatpush.msra.mxu1 %v1308_v0  ;;  %v1358_v5 = vsel %vm903_vm5, %v1350_v58, %v1357_v61  ;;  %v1354_v6 = vperm.slane %v1346_v2, %v3543_v7  ;;  %v1304_v8 = vsel %vm903_vm5, %v1296_v59, %v1303_v63  ;;  %1885 = vmatpush.msra.mxu0 %v1306_v4  ;;  %v1361_v11 = vrot.slane %v1342_v62, 4 }
 0x2a7   : > { %v1356_v9 = vsel %vm903_vm5, %v1355_v1, %v1338_v49  ;;  %v1302_v12 = vsel %vm903_vm5, %v1301_v3, %v1284_v53  ;;  %1862 = vmatpush.msrb.mxu3 %v1304_v8  ;;  %v3160_v30 = vmov 0  }
 0x2a8   : > { %v1359_v13 = vrot.slane %v1354_v6, 4  ;;  %1839 = vmatpush.msrb.mxu2 %v1302_v12  ;;  %v1362_v14 = vsel %vm903_vm5, %v1354_v6, %v1361_v11  ;;  %2810 = vset.pattern.permute.xlu0 %v3160_v30 }
 0x2a9   : > { %1954 = vmatpush.msra.mxu3 %v1358_v5  ;;  %2000 = vmatpush.msrb.mxu1 %v1362_v14 }
 0x2aa   : > { %1931 = vmatpush.msra.mxu2 %v1356_v9  ;;  %v1360_v15 = vsel %vm903_vm5, %v1359_v13, %v1342_v62  ;;  %2809 = vset.pattern.permute.xlu1 %v3160_v30 }
 0x2ab   : > { %1977 = vmatpush.msrb.mxu0 %v1360_v15  ;;  %2811 = vset.pattern.permute.xlu2 %v3160_v30 }
 0x305   : > { %v3717_v17 = vpop.f32.mrf.mxu0 }
 0x306   : > { %v1606_v16 = vsel %vm1371_vm6, %v3717_v17, -inf }
 0x307   : > { %1607 = vmax.xlane.f32.xlu2 %v1606_v16  ;;  %v3729_v10 = vpop.f32.mrf.mxu1 }
 0x308   : > { %v1609_v33 = vsel %vm1371_vm6, %v3729_v10, -inf }
 0x30c   : > { %v3721_v18 = vpop.f32.mrf.mxu3 }
 0x30d   : > { %v1591_v19 = vsel %vm1371_vm6, %v3721_v18, -inf }
 0x30e   : > { %1592 = vmax.xlane.f32.xlu1 %v1591_v19  ;;  %v3725_v20 = vpop.f32.mrf.mxu2 }
 0x30f   : > { %v1588_v21 = vsel %vm1371_vm6, %v3725_v20, -inf }
 0x310   : > { %1589 = vmax.xlane.f32.xlu0 %v1588_v21 }
 0x314   : > { %v3731_v22 = vpop.f32.mrf.mxu3 }
 0x315   : > { %v1597_v26 = vsel %vm1371_vm6, %v3731_v22, -inf }
 0x316   : > { %v3735_v23 = vpop.f32.mrf.mxu2 }
 0x317   : > { %v1594_v24 = vsel %vm1371_vm6, %v3735_v23, -inf }
 0x318   : > { %1610 = vmax.xlane.f32.xlu0 %v1609_v33  ;;  %1595 = vmax.xlane.f32.xlu2 %v1594_v24 }
 0x31c   : > { %v3739_v25 = vpop.f32.mrf.mxu3 }
 0x31d   : > { %v1603_v27 = vsel %vm1371_vm6, %v3739_v25, -inf }
 0x31e   : > { %v3745_v28 = vpop.f32.mrf.mxu2  ;;  %1604 = vmax.xlane.f32.xlu1 %v1603_v27 }
 0x31f   : > { %v1600_v29 = vsel %vm1371_vm6, %v3745_v28, -inf }
 0x320   : > { %1598 = vmax.xlane.f32.xlu2 %v1597_v26  ;;  %1601 = vmax.xlane.f32.xlu0 %v1600_v29 }
 0x37a   : > { %v1608_v32 = vpop.xlane.xlu2 %1607 }
 0x37b   : > { %v3752_v44 = vmax.f32 %v3749_v31, %v1608_v32 }
 0x37d   : > { %v1626_v34 = vsub.f32 %v3749_v31, %v3752_v44  ;;  %2027 = vst.msk [vmem:[#allocation3 + $0x30] sm:$0xff] %vm1756_vm7, %v3752_v44 }
 0x381   : > { %v1593_v35 = vpop.xlane.xlu1 %1592 }
 0x382   : > { %v1613_v37 = vmax.f32 %v1581_v42, %v1593_v35 }
 0x383   : > { %v1590_v38 = vpop.xlane.xlu0 %1589 }
 0x384   : > { %2022 = vst.msk [vmem:[#allocation3 + $0x8] sm:$0xff] %vm1756_vm7, %v1613_v37  ;;  %v1612_v39 = vmax.f32 %v1580_v36, %v1590_v38  ;;  %1651 = vperm.xlu0 %2810, %v1613_v37   ;;  %v1621_v62 = vsub.f32 %v1581_v42, %v1613_v37 }
 0x386   : > { %2021 = vst.msk [vmem:[#allocation3] sm:$0xff] %vm1756_vm7, %v1612_v39  ;;  %1646 = vperm.xlu1 %2809, %v1612_v39   ;;  %v1620_v0 = vsub.f32 %v1580_v36, %v1612_v39  ;;  %v1630_v3 = vmul.f32 1.442695, %v1621_v62 }
 0x388   : > { %v1628_v4 = vmul.f32 1.442695, %v1620_v0 }
 0x38b   : > { %v1611_v43 = vpop.xlane.xlu0 %1610  ;;  %v1596_v45 = vpop.xlane.xlu2 %1595 }
 0x38c   : > { %v3763_v46 = vmax.f32 %v3760_v40, %v1611_v43  ;;  %v1614_v47 = vmax.f32 %v1582_v41, %v1596_v45  ;;  %1676 = vperm.xlu0 %2810, %v3752_v44  }
 0x38e   : > { %v1627_v48 = vsub.f32 %v3760_v40, %v3763_v46  ;;  %2028 = vst.msk [vmem:[#allocation3 + $0x38] sm:$0xff] %vm1756_vm7, %v3763_v46  ;;  %v1622_v49 = vsub.f32 %v1582_v41, %v1614_v47  ;;  %1656 = vperm.xlu2 %2811, %v1614_v47   ;;  %v1640_v40 = vmul.f32 1.442695, %v1626_v34 }
 0x38f   : > { %2023 = vst.msk [vmem:[#allocation3 + $0x10] sm:$0xff] %vm1756_vm7, %v1614_v47 }
 0x390   : > { %v1632_v51 = vmul.f32 1.442695, %v1622_v49  ;;  %v1642_v62 = vmul.f32 1.442695, %v1627_v48 }
 0x391   : > { %v1605_v53 = vpop.xlane.xlu1 %1604 }
 0x392   : > { %v3774_v56 = vmax.f32 %v3771_v50, %v1605_v53  ;;  %2814 = vpow2.f32 %v1632_v51 }
 0x393   : > { %v1599_v57 = vpop.xlane.xlu2 %1598  ;;  %v1602_v58 = vpop.xlane.xlu0 %1601 }
 0x394   : > { %v1615_v59 = vmax.f32 %v1583_v52, %v1599_v57  ;;  %v1616_v60 = vmax.f32 %v1584_v55, %v1602_v58  ;;  %v1625_v61 = vsub.f32 %v3771_v50, %v3774_v56  ;;  %2026 = vst.msk [vmem:[#allocation3 + $0x28] sm:$0xff] %vm1756_vm7, %v3774_v56 }
 0x396   : > { %2024 = vst.msk [vmem:[#allocation3 + $0x18] sm:$0xff] %vm1756_vm7, %v1615_v59  ;;  %v1624_v63 = vsub.f32 %v1584_v55, %v1616_v60  ;;  %1661 = vperm.xlu1 %2809, %v1615_v59   ;;  %1666 = vperm.xlu2 %2811, %v1616_v60   ;;  %v1623_v5 = vsub.f32 %v1583_v52, %v1615_v59 }
 0x397   : > { %2025 = vst.msk [vmem:[#allocation3 + $0x20] sm:$0xff] %vm1756_vm7, %v1616_v60 }
 0x398   : > { %v1636_v1 = vmul.f32 1.442695, %v1624_v63  ;;  %v3782_v2 = vpop.eup %2814  ;;  %v1634_v8 = vmul.f32 1.442695, %v1623_v5  ;;  %v1638_v63 = vmul.f32 1.442695, %v1625_v61 }
 0x399   : > { %1785 = vperm.xlu0 %2810, %v3782_v2   ;;  %v1710_v5 = vld [vmem:[#allocation4 + $0x10] sm:$0xff] }
 0x39a   : > { %2816 = vpow2.f32 %v1636_v1  ;;  %v1718_v50 = vmul.f32 %v3782_v2, %v1710_v5 }
 0x39b   : > { %2818 = vpow2.f32 %v1630_v3 }
 0x39c   : > { %2820 = vpow2.f32 %v1628_v4 }
 0x39d   : > { %2822 = vpow2.f32 %v1634_v8  ;;  %v1767_v8 = vld [vmem:[#allocation5 + $0x10] sm:$0xff] }
 0x39e   : > { %1671 = vperm.xlu1 %2809, %v3774_v56   ;;  %1681 = vperm.xlu2 %2811, %v3763_v46  }
 0x3a0   : > { %v3787_v6 = vpop.eup %2816 }
 0x3a1   : > { %1795 = vperm.xlu0 %2810, %v3787_v6   ;;  %v3790_v9 = vpop.eup %2818 }
 0x3a2   : > { %v3792_v11 = vpop.eup %2820 }
 0x3a3   : > { %v3796_v12 = vpop.eup %2822 }
 0x3a6   : > { %1780 = vperm.xlu1 %2809, %v3790_v9   ;;  %1775 = vperm.xlu2 %2811, %v3792_v11  }
 0x3ae   : > { %1790 = vperm.xlu2 %2811, %v3796_v12  }
 0x3e8   : > { %v1657_v13 = vpop.permute.xlu2 %1656 }
 0x3e9   : > { %v1686_v14 = vsub.f32 %v3735_v23, %v1657_v13 }
 0x3eb   : > { %v1696_v15 = vmul.f32 1.442695, %v1686_v14 }
 0x3ed   : > { %2824 = vpow2.f32 %v1696_v15  ;;  %v1709_v15 = vld [vmem:[#allocation4 + $0x8] sm:$0xff] }
 0x3f0   : > { %v1667_v16 = vpop.permute.xlu2 %1666 }
 0x3f1   : > { %v1688_v42 = vsub.f32 %v3745_v28, %v1667_v16  ;;  %v1708_v16 = vld [vmem:[#allocation4] sm:$0xff] }
 0x3f2   : > { %v1716_v2 = vmul.f32 %v3792_v11, %v1708_v16 }
 0x3f3   : > { %v2825_v19 = vpop.eup %2824  ;;  %v1700_v39 = vmul.f32 1.442695, %v1688_v42 }
 0x3f4   : > { %2648 = vmatmul.msk.f32.vlgmr.msra.gmra.mxu0 %vm1371_vm6, %v2825_v19  ;;  %v1730_v21 = vsel %vm1371_vm6, %v2825_v19, 0.0  ;;  %v1717_v19 = vmul.f32 %v3790_v9, %v1709_v15 }
 0x3f5   : > { %1731 = vadd.xlane.f32.xlu2 %v1730_v21 }
 0x3f6   : > { %v1652_v33 = vpop.permute.xlu0 %1651 }
 0x3f7   : > { %v1685_v24 = vsub.f32 %v3721_v18, %v1652_v33 }
 0x3f8   : > { %v1647_v26 = vpop.permute.xlu1 %1646  ;;  %v1682_v27 = vpop.permute.xlu2 %1681 }
 0x3f9   : > { %v1694_v29 = vmul.f32 1.442695, %v1685_v24  ;;  %v1684_v30 = vsub.f32 %v3725_v20, %v1647_v26  ;;  %v1691_v32 = vsub.f32 %v3729_v10, %v1682_v27  ;;  %v1715_v27 = vld [vmem:[#allocation4 + $0x38] sm:$0xff] }
 0x3fb   : > { %2826 = vpow2.f32 %v1694_v29  ;;  %v1692_v23 = vmul.f32 1.442695, %v1684_v30  ;;  %v1706_v35 = vmul.f32 1.442695, %v1691_v32  ;;  %v1714_v29 = vld [vmem:[#allocation4 + $0x30] sm:$0xff] }
 0x3fd   : > { %2828 = vpow2.f32 %v1692_v23 }
 0x3fe   : > { %v1677_v36 = vpop.permute.xlu0 %1676  ;;  %2830 = vpow2.f32 %v1706_v35 }
 0x3ff   : > { %v1690_v37 = vsub.f32 %v3717_v17, %v1677_v36  ;;  %v1766_v36 = vld [vmem:[#allocation5 + $0x8] sm:$0xff] }
 0x400   : > { %v1776_v1 = vpop.permute.xlu2 %1775 }
 0x401   : > { %v2827_v38 = vpop.eup %2826  ;;  %v1704_v18 = vmul.f32 1.442695, %v1690_v37  ;;  %v1712_v37 = vld [vmem:[#allocation4 + $0x20] sm:$0xff] }
 0x402   : > { %2647 = vmatmul.msk.f32.vlgmr.msrb.gmra.mxu3 %vm1371_vm6, %v2827_v38  ;;  %v1727_v41 = vsel %vm1371_vm6, %v2827_v38, 0.0  ;;  %v1765_v38 = vld [vmem:[#allocation5] sm:$0xff] }
 0x403   : > { %v2829_v20 = vpop.eup %2828  ;;  %2832 = vpow2.f32 %v1704_v18  ;;  %1728 = vadd.xlane.f32.xlu0 %v1727_v41  ;;  %v1720_v41 = vmul.f32 %v3787_v6, %v1712_v37  ;;  %v1713_v6 = vld [vmem:[#allocation4 + $0x28] sm:$0xff] }
 0x404   : > { %2646 = vmatmul.msk.f32.vlgmr.msrb.gmra.mxu2 %vm1371_vm6, %v2829_v20  ;;  %v1724_v10 = vsel %vm1371_vm6, %v2829_v20, 0.0  ;;  %2834 = vpow2.f32 %v1700_v39  ;;  %v2831_v28 = vpop.eup %2830  ;;  %v1711_v39 = vld [vmem:[#allocation4 + $0x18] sm:$0xff]  ;;  %v1813_v20 = vmul.f32 %v1776_v1, %v1765_v38 }
 0x405   : > { %1725 = vadd.xlane.f32.xlu1 %v1724_v10  ;;  %v1745_v47 = vsel %vm1371_vm6, %v2831_v28, 0.0 }
 0x408   : > { %v1662_v43 = vpop.permute.xlu1 %1661  ;;  %v1791_v3 = vpop.permute.xlu2 %1790 }
 0x409   : > { %v2833_v17 = vpop.eup %2832  ;;  %v1687_v45 = vsub.f32 %v3731_v22, %v1662_v43 }
 0x40a   : > { %2652 = vmatmul.msk.f32.vlgmr.msrb.gmra.mxu0 %vm1371_vm6, %v2833_v17  ;;  %v2835_v49 = vpop.eup %2834  ;;  %v1742_v52 = vsel %vm1371_vm6, %v2833_v17, 0.0 }
 0x40b   : > { %v1698_v51 = vmul.f32 1.442695, %v1687_v45  ;;  %1746 = vadd.xlane.f32.xlu0 %v1745_v47  ;;  %v1736_v57 = vsel %vm1371_vm6, %v2835_v49, 0.0  ;;  %v1786_v4 = vpop.permute.xlu0 %1785  ;;  %v1719_v45 = vmul.f32 %v3796_v12, %v1711_v39 }
 0x40c   : > { %2650 = vmatmul.msk.f32.vlgmr.msra.gmra.mxu2 %vm1371_vm6, %v2835_v49  ;;  %v1815_v44 = vmul.f32 %v1786_v4, %v1767_v8 }
 0x40d   : > { %2836 = vpow2.f32 %v1698_v51  ;;  %1743 = vadd.xlane.f32.xlu1 %v1742_v52  ;;  %v1769_v52 = vld [vmem:[#allocation5 + $0x20] sm:$0xff] }
 0x410   : > { %v1672_v55 = vpop.permute.xlu1 %1671 }
 0x411   : > { %v1689_v53 = vsub.f32 %v3739_v25, %v1672_v55  ;;  %v1768_v55 = vld [vmem:[#allocation5 + $0x18] sm:$0xff] }
 0x413   : > { %v2837_v58 = vpop.eup %2836  ;;  %v1702_v22 = vmul.f32 1.442695, %v1689_v53  ;;  %1737 = vadd.xlane.f32.xlu0 %v1736_v57  ;;  %v1796_v31 = vpop.permute.xlu0 %1795 }
 0x414   : > { %2649 = vmatmul.msk.f32.vlgmr.msra.gmra.mxu1 %vm1371_vm6, %v2837_v58  ;;  %v1733_v59 = vsel %vm1371_vm6, %v2837_v58, 0.0  ;;  %v1817_v53 = vmul.f32 %v1796_v31, %v1769_v52 }
 0x415   : > { %2838 = vpow2.f32 %v1702_v22  ;;  %1734 = vadd.xlane.f32.xlu1 %v1733_v59  ;;  %v1816_v22 = vmul.f32 %v1791_v3, %v1768_v55 }
 0x416   : > { %2840 = vpow2.f32 %v1642_v62 }
 0x417   : > { %2842 = vpow2.f32 %v1638_v63  ;;  %v1771_v63 = vld [vmem:[#allocation5 + $0x30] sm:$0xff] }
 0x418   : > { %2844 = vpow2.f32 %v1640_v40  ;;  %v1781_v34 = vpop.permute.xlu1 %1780 }
 0x419   : > { %v1814_v11 = vmul.f32 %v1781_v34, %v1766_v36 }
 0x41b   : > { %v2839_v60 = vpop.eup %2838 }
 0x41c   : > { %2651 = vmatmul.msk.f32.vlgmr.msra.gmra.mxu3 %vm1371_vm6, %v2839_v60  ;;  %2653 = vmatmul.msk.f32.vlgmr.msrb.gmra.mxu1 %vm1371_vm6, %v2831_v28  ;;  %v1739_v25 = vsel %vm1371_vm6, %v2839_v60, 0.0  ;;  %v2841_v0 = vpop.eup %2840 }
 0x41d   : > { %1740 = vadd.xlane.f32.xlu2 %v1739_v25  ;;  %v3832_v46 = vpop.eup %2842  ;;  %v1723_v30 = vmul.f32 %v2841_v0, %v1715_v27 }
 0x41e   : > { %v2845_v48 = vpop.eup %2844  ;;  %v1721_v58 = vmul.f32 %v3832_v46, %v1713_v6 }
 0x41f   : > { %v1722_v42 = vmul.f32 %v2845_v48, %v1714_v29 }
 0x427   : > { %1810 = vperm.xlu0 %2810, %v2841_v0   ;;  %v1772_v0 = vld [vmem:[#allocation5 + $0x38] sm:$0xff] }
 0x42e   : > { %1800 = vperm.xlu1 %2809, %v3832_v46  }
 0x435   : > { %1805 = vperm.xlu2 %2811, %v2845_v48  }
 0x468   : > { %v1732_v56 = vpop.xlane.xlu2 %1731 }
 0x469   : > { %v1750_v61 = vadd.f32 %v1732_v56, %v1718_v50  ;;  %v1770_v56 = vld [vmem:[#allocation5 + $0x28] sm:$0xff] }
 0x46b   : > { %1759 = vst.msk [vmem:[#allocation4 + $0x10] sm:$0xff] %vm1756_vm7, %v1750_v61 }
 0x471   : > { %v1887_v13 = vpop.f32.mrf.mxu0 }
 0x472   : > { %v2007_v14 = vadd.f32 %v1887_v13, %v1815_v44 }
 0x474   : > { %2015 = vst.msk [vmem:[#allocation5 + $0x10] sm:$0xff] %vm1371_vm6, %v2007_v14 }
 0x476   : > { %v1729_v21 = vpop.xlane.xlu0 %1728 }
 0x477   : > { %v1749_v33 = vadd.f32 %v1729_v21, %v1717_v19 }
 0x478   : > { %v1726_v24 = vpop.xlane.xlu1 %1725 }
 0x479   : > { %1758 = vst.msk [vmem:[#allocation4 + $0x8] sm:$0xff] %vm1756_vm7, %v1749_v33  ;;  %v1748_v26 = vadd.f32 %v1726_v24, %v1716_v2 }
 0x47b   : > { %1757 = vst.msk [vmem:[#allocation4] sm:$0xff] %vm1756_vm7, %v1748_v26 }
 0x47e   : > { %v1747_v32 = vpop.xlane.xlu0 %1746 }
 0x47f   : > { %v1755_v23 = vadd.f32 %v1747_v32, %v1723_v30 }
 0x480   : > { %v1744_v35 = vpop.xlane.xlu1 %1743 }
 0x481   : > { %1764 = vst.msk [vmem:[#allocation4 + $0x38] sm:$0xff] %vm1756_vm7, %v1755_v23  ;;  %v1754_v9 = vadd.f32 %v1744_v35, %v1722_v42 }
 0x483   : > { %1763 = vst.msk [vmem:[#allocation4 + $0x30] sm:$0xff] %vm1756_vm7, %v1754_v9 }
 0x485   : > { %v1864_v18 = vpop.f32.mrf.mxu3 }
 0x486   : > { %v2006_v10 = vadd.f32 %v1864_v18, %v1814_v11  ;;  %v1738_v28 = vpop.xlane.xlu0 %1737 }
 0x487   : > { %v1752_v43 = vadd.f32 %v1738_v28, %v1720_v41  ;;  %v1841_v17 = vpop.f32.mrf.mxu2  ;;  %v1979_v4 = vpop.f32.mrf.mxu0 }
 0x488   : > { %2014 = vst.msk [vmem:[#allocation5 + $0x8] sm:$0xff] %vm1371_vm6, %v2006_v10  ;;  %v2005_v47 = vadd.f32 %v1841_v17, %v1813_v20  ;;  %v1735_v49 = vpop.xlane.xlu1 %1734 }
 0x489   : > { %1761 = vst.msk [vmem:[#allocation4 + $0x20] sm:$0xff] %vm1756_vm7, %v1752_v43  ;;  %v1751_v51 = vadd.f32 %v1735_v49, %v1719_v45 }
 0x48a   : > { %2013 = vst.msk [vmem:[#allocation5] sm:$0xff] %vm1371_vm6, %v2005_v47 }
 0x48b   : > { %1760 = vst.msk [vmem:[#allocation4 + $0x18] sm:$0xff] %vm1756_vm7, %v1751_v51 }
 0x48f   : > { %v1933_v57 = vpop.f32.mrf.mxu2 }
 0x490   : > { %v2009_v12 = vadd.f32 %v1933_v57, %v1817_v53  ;;  %v1741_v59 = vpop.xlane.xlu2 %1740 }
 0x491   : > { %v1753_v60 = vadd.f32 %v1741_v59, %v1721_v58  ;;  %v1910_v62 = vpop.f32.mrf.mxu1 }
 0x492   : > { %2017 = vst.msk [vmem:[#allocation5 + $0x20] sm:$0xff] %vm1371_vm6, %v2009_v12  ;;  %v2008_v25 = vadd.f32 %v1910_v62, %v1816_v22 }
 0x493   : > { %1762 = vst.msk [vmem:[#allocation4 + $0x28] sm:$0xff] %vm1756_vm7, %v1753_v60 }
 0x494   : > { %2016 = vst.msk [vmem:[#allocation5 + $0x18] sm:$0xff] %vm1371_vm6, %v2008_v25 }
 0x498   : > { %v1806_v40 = vpop.permute.xlu2 %1805 }
 0x499   : > { %v1819_v48 = vmul.f32 %v1806_v40, %v1771_v63  ;;  %v1811_v1 = vpop.permute.xlu0 %1810  ;;  %v2002_v3 = vpop.f32.mrf.mxu1 }
 0x49a   : > { %v1820_v5 = vmul.f32 %v1811_v1, %v1772_v0 }
 0x49b   : > { %v2011_v46 = vadd.f32 %v1979_v4, %v1819_v48 }
 0x49c   : > { %v2012_v50 = vadd.f32 %v2002_v3, %v1820_v5 }
 0x49d   : > { %2019 = vst.msk [vmem:[#allocation5 + $0x30] sm:$0xff] %vm1371_vm6, %v2011_v46 }
 0x49e   : > { %2020 = vst.msk [vmem:[#allocation5 + $0x38] sm:$0xff] %vm1371_vm6, %v2012_v50 }
 0x49f   : > { %v1956_v31 = vpop.f32.mrf.mxu3 }
 0x4a0   : > { %v1801_v61 = vpop.permute.xlu1 %1800 }
 0x4a1   : > { %v1818_v8 = vmul.f32 %v1801_v61, %v1770_v56  ;;  %2032 = sbr.rel (%p2654_p1) target bundleno = 1495 (0x5d7), region = 88 }
 0x4a3   : > { %v2010_v44 = vadd.f32 %v1956_v31, %v1818_v8 }
 0x4a5   : > { %2018 = vst.msk [vmem:[#allocation5 + $0x28] sm:$0xff] %vm1371_vm6, %v2010_v44 }
 0x4a6   : > { %v2043_v34 = vld [vmem:[#allocation4 + $0x10] sm:$0xff]  ;;  %v2041_v13 = vld [vmem:[#allocation4] sm:$0xff]  ;;  %v3161_v14 = vmov 0   ;;  %v2044_v19 = vld [vmem:[#allocation4 + $0x18] sm:$0xff] }
 0x4a7   : > { %2847 = vset.pattern.permute.xlu1 %v3161_v14  ;;  %2846 = vset.pattern.permute.xlu0 %v3161_v14  ;;  %v2045_v15 = vld [vmem:[#allocation4 + $0x20] sm:$0xff]  ;;  %v2047_v16 = vld [vmem:[#allocation4 + $0x30] sm:$0xff]  ;;  %v2048_v21 = vld [vmem:[#allocation4 + $0x38] sm:$0xff] }
 0x4a8   : > { %2061 = vperm.xlu0 %2846, %v2043_v34   ;;  %2051 = vperm.xlu1 %2847, %v2041_v13   ;;  %v2042_v33 = vld [vmem:[#allocation4 + $0x8] sm:$0xff]  ;;  %v2037_v53 = vld [vmem:[#allocation5 + $0x20] sm:$0xff] }
 0x4a9   : > { %2848 = vset.pattern.permute.xlu2 %v3161_v14  ;;  %v2046_v2 = vld [vmem:[#allocation4 + $0x28] sm:$0xff]  ;;  %v2035_v14 = vld [vmem:[#allocation5 + $0x10] sm:$0xff] }
 0x4aa   : > { %2071 = vperm.xlu2 %2848, %v2045_v15  }
 0x4b0   : > { %2081 = vperm.xlu0 %2846, %v2047_v16   ;;  %2066 = vperm.xlu1 %2847, %v2044_v19  }
 0x4b2   : > { %2086 = vperm.xlu2 %2848, %v2048_v21  }
 0x4b8   : > { %2056 = vperm.xlu0 %2846, %v2042_v33   ;;  %2076 = vperm.xlu1 %2847, %v2046_v2  }
 0x504   : > { %v2072_v24 = vpop.permute.xlu2 %2071 }
 0x505   : > { %2849 = vrcp.f32 %v2072_v24  ;;  %vm2154_vm8 = vweird.f32 %v2072_v24  ;;  %v2158_v36 = vand.u32 2147483647, %v2072_v24  ;;  %v2160_v9 = vand.u32 2147483648, %v2072_v24 }
 0x507   : > { %vm2159_vm11 = vcmp.eq.f32.partialorder %v2158_v36, 8.507059e+37  ;;  %v2161_v41 = vor.u32 1.1754944e-38, %v2160_v9 }
 0x50b   : > { %v2850_v26 = vpop.eup %2849 }
 0x50c   : > { %v2150_v27 = vmul.f32 %v2850_v26, %v2072_v24  ;;  %v3858_v29 = vpop.permute.xlu2 %2086  ;;  %vm2155_vm9 = vweird.f32 %v2850_v26 }
 0x50d   : > { %2851 = vrcp.f32 %v3858_v29  ;;  %vm3868_vm10 = vmor %vm2154_vm8, %vm2155_vm9  ;;  %v2203_v49 = vand.u32 2147483647, %v3858_v29  ;;  %v2205_v51 = vand.u32 2147483648, %v3858_v29  ;;  %vm2199_vm12 = vweird.f32 %v3858_v29 }
 0x50e   : > { %v2151_v30 = vsub.f32 1.0, %v2150_v27 }
 0x50f   : > { %vm3892_vm1 = vcmp.eq.f32.partialorder %v2203_v49, 8.507059e+37  ;;  %v2206_v63 = vor.u32 1.1754944e-38, %v2205_v51  ;;  %v2040_v49 = vld [vmem:[#allocation5 + $0x38] sm:$0xff] }
 0x510   : > { %v2152_v42 = vmul.f32 %v2850_v26, %v2151_v30 }
 0x512   : > { %v2153_v37 = vadd.f32 %v2850_v26, %v2152_v42  ;;  %v2039_v42 = vld [vmem:[#allocation5 + $0x30] sm:$0xff] }
 0x513   : > { %v3863_v35 = vpop.eup %2851 }
 0x514   : > { %v2195_v38 = vmul.f32 %v3863_v35, %v3858_v29  ;;  %v2157_v43 = vsel %vm3868_vm10, %v2850_v26, %v2153_v37  ;;  %vm2200_vm0 = vweird.f32 %v3863_v35  ;;  %v2033_v26 = vld [vmem:[#allocation5] sm:$0xff] }
 0x515   : > { %v2162_v6 = vsel %vm2159_vm11, %v2161_v41, %v2157_v43  ;;  %vm3927_vm9 = vmor %vm2199_vm12, %vm2200_vm0 }
 0x516   : > { %v2196_v17 = vsub.f32 1.0, %v2195_v38  ;;  %v3904_v4 = vmul.f32 %v2162_v6, %v2037_v53 }
 0x518   : > { %v2197_v57 = vmul.f32 %v3863_v35, %v2196_v17 }
 0x51a   : > { %v2062_v32 = vpop.permute.xlu0 %2061  ;;  %v3861_v23 = vpop.permute.xlu1 %2051  ;;  %v2198_v50 = vadd.f32 %v3863_v35, %v2197_v57  ;;  %v2036_v57 = vld [vmem:[#allocation5 + $0x18] sm:$0xff] }
 0x51b   : > { %2853 = vrcp.f32 %v2062_v32  ;;  %v2128_v58 = vand.u32 2147483647, %v2062_v32  ;;  %v2130_v22 = vand.u32 2147483648, %v2062_v32  ;;  %vm2124_vm14 = vweird.f32 %v2062_v32 }
 0x51c   : > { %2855 = vrcp.f32 %v3861_v23  ;;  %v2098_v60 = vand.u32 2147483647, %v3861_v23  ;;  %v2100_v48 = vand.u32 2147483648, %v3861_v23  ;;  %vm2094_vm3 = vweird.f32 %v3861_v23 }
 0x51d   : > { %vm2129_vm7 = vcmp.eq.f32.partialorder %v2128_v58, 8.507059e+37  ;;  %v2131_v56 = vor.u32 1.1754944e-38, %v2130_v22  ;;  %v2202_v24 = vsel %vm3927_vm9, %v3863_v35, %v2198_v50 }
 0x51e   : > { %vm2099_vm10 = vcmp.eq.f32.partialorder %v2098_v60, 8.507059e+37  ;;  %v2101_v16 = vor.u32 1.1754944e-38, %v2100_v48  ;;  %v2207_v43 = vsel %vm3892_vm1, %v2206_v63, %v2202_v24 }
 0x521   : > { %v2854_v39 = vpop.eup %2853 }
 0x522   : > { %v3872_v18 = vpop.eup %2855  ;;  %v2120_v20 = vmul.f32 %v2854_v39, %v2062_v32  ;;  %v3874_v10 = vpop.permute.xlu0 %2081  ;;  %vm2125_vm13 = vweird.f32 %v2854_v39 }
 0x523   : > { %v3876_v28 = vpop.permute.xlu1 %2066  ;;  %v2090_v45 = vmul.f32 %v3872_v18, %v3861_v23  ;;  %2857 = vrcp.f32 %v3874_v10  ;;  %vm2095_vm15 = vweird.f32 %v3872_v18  ;;  %vm3896_vm2 = vmor %vm2124_vm14, %vm2125_vm13  ;;  %v2190_v19 = vand.u32 2147483648, %v3874_v10 }
 0x524   : > { %v2121_v47 = vsub.f32 1.0, %v2120_v20  ;;  %2859 = vrcp.f32 %v3876_v28  ;;  %vm3915_vm8 = vmor %vm2094_vm3, %vm2095_vm15  ;;  %v2188_v2 = vand.u32 2147483647, %v3874_v10  ;;  %vm2184_vm13 = vweird.f32 %v3874_v10 }
 0x525   : > { %v2091_v52 = vsub.f32 1.0, %v2090_v45  ;;  %v2145_v23 = vand.u32 2147483648, %v3876_v28  ;;  %v2191_v36 = vor.u32 1.1754944e-38, %v2190_v19  ;;  %vm2139_vm15 = vweird.f32 %v3876_v28 }
 0x526   : > { %v2122_v55 = vmul.f32 %v2854_v39, %v2121_v47  ;;  %v2143_v35 = vand.u32 2147483647, %v3876_v28  ;;  %vm2189_vm0 = vcmp.eq.f32.partialorder %v2188_v2, 8.507059e+37 }
 0x527   : > { %v2092_v12 = vmul.f32 %v3872_v18, %v2091_v52  ;;  %v2146_v45 = vor.u32 1.1754944e-38, %v2145_v23 }
 0x528   : > { %v2123_v59 = vadd.f32 %v2854_v39, %v2122_v55  ;;  %vm2144_vm3 = vcmp.eq.f32.partialorder %v2143_v35, 8.507059e+37 }
 0x529   : > { %v2858_v62 = vpop.eup %2857  ;;  %v2093_v40 = vadd.f32 %v3872_v18, %v2092_v12 }
 0x52a   : > { %v3902_v1 = vpop.eup %2859  ;;  %v2127_v5 = vsel %vm3896_vm2, %v2854_v39, %v2123_v59  ;;  %v2180_v46 = vmul.f32 %v2858_v62, %v3874_v10  ;;  %v3910_v3 = vpop.permute.xlu0 %2056  ;;  %vm2185_vm11 = vweird.f32 %v2858_v62  ;;  %v2267_v10 = vrot.slane %v3904_v4, 4 }
 0x52b   : > { %v2135_v8 = vmul.f32 %v3902_v1, %v3876_v28  ;;  %v3921_v31 = vpop.permute.xlu1 %2076  ;;  %v2097_v34 = vsel %vm3915_vm8, %v3872_v18, %v2093_v40  ;;  %2861 = vrcp.f32 %v3910_v3  ;;  %v2132_v15 = vsel %vm2129_vm7, %v2131_v56, %v2127_v5  ;;  %vm2186_vm14 = vmor %vm2184_vm13, %vm2185_vm11 }
 0x52c   : > { %v2181_v13 = vsub.f32 1.0, %v2180_v46  ;;  %2863 = vrcp.f32 %v3921_v31  ;;  %v2102_v27 = vsel %vm2099_vm10, %v2101_v16, %v2097_v34  ;;  %vm2140_vm12 = vweird.f32 %v3902_v1 }
 0x52d   : > { %v2136_v21 = vsub.f32 1.0, %v2135_v8  ;;  %v2133_v30 = vmul.f32 %v2132_v15, %v2035_v14  ;;  %v2103_v38 = vmul.f32 %v2102_v27, %v2033_v26  ;;  %vm3950_vm2 = vmor %vm2139_vm15, %vm2140_vm12  ;;  %v2113_v52 = vand.u32 2147483647, %v3910_v3  ;;  %v2038_v8 = vld [vmem:[#allocation5 + $0x28] sm:$0xff] }
 0x52e   : > { %v2182_v33 = vmul.f32 %v2858_v62, %v2181_v13  ;;  %v2115_v22 = vand.u32 2147483648, %v3910_v3  ;;  %v2173_v60 = vand.u32 2147483647, %v3921_v31  ;;  %vm2109_vm1 = vweird.f32 %v3910_v3 }
 0x52f   : > { %v2137_v29 = vmul.f32 %v3902_v1, %v2136_v21  ;;  %v2209_v47 = vrot.slane %v2133_v30, 4  ;;  %v2211_v55 = vrot.slane %v2103_v38, 4  ;;  %v2175_v25 = vand.u32 2147483648, %v3921_v31 }
 0x530   : > { %v2183_v32 = vadd.f32 %v2858_v62, %v2182_v33  ;;  %vm2114_vm10 = vcmp.eq.f32.partialorder %v2113_v52, 8.507059e+37  ;;  %v2116_v5 = vor.u32 1.1754944e-38, %v2115_v22  ;;  %vm2169_vm11 = vweird.f32 %v3921_v31 }
 0x531   : > { %v2138_v9 = vadd.f32 %v3902_v1, %v2137_v29  ;;  %v2862_v37 = vpop.eup %2861  ;;  %v2210_v63 = vsel %vm903_vm5, %v2209_v47, %v2103_v38  ;;  %vm2174_vm12 = vcmp.eq.f32.partialorder %v2173_v60, 8.507059e+37  ;;  %v2176_v44 = vor.u32 1.1754944e-38, %v2175_v25 }
 0x532   : > { %v2187_v11 = vsel %vm2186_vm14, %v2858_v62, %v2183_v32  ;;  %v2105_v20 = vmul.f32 %v2862_v37, %v3910_v3  ;;  %v2864_v28 = vpop.eup %2863  ;;  %vm2110_vm7 = vweird.f32 %v2862_v37  ;;  %v2208_v62 = vmul.f32 %v2207_v43, %v2040_v49 }
 0x533   : > { %v2192_v18 = vsel %vm2189_vm0, %v2191_v36, %v2187_v11  ;;  %v2142_v41 = vsel %vm3950_vm2, %v3902_v1, %v2138_v9  ;;  %v2165_v6 = vmul.f32 %v2864_v28, %v3921_v31  ;;  %vm2170_vm8 = vweird.f32 %v2864_v28  ;;  %v2034_v1 = vld [vmem:[#allocation5 + $0x8] sm:$0xff]  ;;  %vm2111_vm9 = vmor %vm2109_vm1, %vm2110_vm7 }
 0x534   : > { %v2193_v17 = vmul.f32 %v2192_v18, %v2039_v42  ;;  %v2106_v51 = vsub.f32 1.0, %v2105_v20  ;;  %v2147_v58 = vsel %vm2144_vm3, %v2146_v45, %v2142_v41  ;;  %v2212_v3 = vsel %vm903_vm5, %v2133_v30, %v2211_v55  ;;  %vm2171_vm13 = vmor %vm2169_vm11, %vm2170_vm8 }
 0x535   : > { %v2166_v59 = vsub.f32 1.0, %v2165_v6  ;;  %v2148_v0 = vmul.f32 %v2147_v58, %v2036_v57  ;;  %v2216_v13 = vperm.slane %v2210_v63, %v3533_v54  ;;  %v2277_v19 = vrot.slane %v2208_v62, 4 }
 0x536   : > { %v2265_v53 = vrot.slane %v2193_v17, 4  ;;  %v2107_v12 = vmul.f32 %v2862_v37, %v2106_v51  ;;  %v2268_v34 = vsel %vm903_vm5, %v2193_v17, %v2267_v10  ;;  %v2220_v21 = vperm.slane %v2212_v3, %v3533_v54 }
 0x537   : > { %v2167_v48 = vmul.f32 %v2864_v28, %v2166_v59  ;;  %v2221_v14 = vrot.slane %v2148_v0, 4  ;;  %v2276_v24 = vperm.slane %v2268_v34, %v3533_v54  ;;  %v2235_v29 = vrot.slane %v2216_v13, 4 }
 0x538   : > { %v2108_v40 = vadd.f32 %v2862_v37, %v2107_v12  ;;  %v2266_v46 = vsel %vm903_vm5, %v2265_v53, %v3904_v4  ;;  %v2247_v18 = vrot.slane %v2220_v21, 4  ;;  %vm2455_vm14 = vcmask 130048  }
 0x539   : > { %v2168_v56 = vadd.f32 %v2864_v28, %v2167_v48  ;;  %v2272_v31 = vperm.slane %v2266_v46, %v3533_v54  ;;  %v2303_v11 = vrot.slane %v2276_v24, 4  ;;  %vm2458_vm15 = vcmask 195584  }
 0x53a   : > { %v2112_v50 = vsel %vm2111_vm9, %v2862_v37, %v2108_v40 }
 0x53b   : > { %v2117_v61 = vsel %vm2114_vm10, %v2116_v5, %v2112_v50  ;;  %v2172_v16 = vsel %vm2171_vm13, %v2864_v28, %v2168_v56  ;;  %v2291_v23 = vrot.slane %v2272_v31, 4 }
 0x53c   : > { %v2118_v15 = vmul.f32 %v2117_v61, %v2034_v1  ;;  %v2177_v4 = vsel %vm2174_vm12, %v2176_v44, %v2172_v16 }
 0x53d   : > { %v2178_v2 = vmul.f32 %v2177_v4, %v2038_v8 }
 0x53e   : > { %v2223_v33 = vrot.slane %v2118_v15, 4  ;;  %v2222_v26 = vsel %vm903_vm5, %v2221_v14, %v2118_v15 }
 0x53f   : > { %v2228_v27 = vperm.slane %v2222_v26, %v3533_v54  ;;  %v2278_v30 = vsel %vm903_vm5, %v2277_v19, %v2178_v2  ;;  %v2279_v32 = vrot.slane %v2178_v2, 4 }
 0x540   : > { %v2224_v42 = vsel %vm903_vm5, %v2148_v0, %v2223_v33  ;;  %v2284_v36 = vperm.slane %v2278_v30, %v3533_v54 }
 0x541   : > { %v2232_v9 = vperm.slane %v2224_v42, %v3533_v54  ;;  %v2233_v35 = vrot.slane %v2228_v27, 4  ;;  %v2236_v37 = vsel %vm903_vm5, %v2228_v27, %v2235_v29  ;;  %v2280_v38 = vsel %vm903_vm5, %v2208_v62, %v2279_v32 }
 0x542   : > { %v2244_v39 = vperm.slane %v2236_v37, %v3543_v7  ;;  %v2288_v41 = vperm.slane %v2280_v38, %v3533_v54  ;;  %v2289_v20 = vrot.slane %v2284_v36, 4  ;;  %v2292_v10 = vsel %vm903_vm5, %v2284_v36, %v2291_v23 }
 0x543   : > { %v2234_v28 = vsel %vm903_vm5, %v2233_v35, %v2216_v13  ;;  %v2300_v43 = vperm.slane %v2292_v10, %v3543_v7  ;;  %v2245_v45 = vrot.slane %v2232_v9, 4  ;;  %v2248_v47 = vsel %vm903_vm5, %v2232_v9, %v2247_v18 }
 0x544   : > { %v2240_v17 = vperm.slane %v2234_v28, %v3543_v7  ;;  %v2290_v49 = vsel %vm903_vm5, %v2289_v20, %v2272_v31  ;;  %v2301_v51 = vrot.slane %v2288_v41, 4  ;;  %v2304_v52 = vsel %vm903_vm5, %v2288_v41, %v2303_v11 }
 0x545   : > { %v2256_v6 = vperm.slane %v2248_v47, %v3543_v7  ;;  %v2296_v55 = vperm.slane %v2290_v49, %v3543_v7  ;;  %v2312_v53 = vperm.slane %v2304_v52, %v3543_v7  ;;  %v2315_v57 = vrot.slane %v2300_v43, 4 }
 0x546   : > { %v2246_v58 = vsel %vm903_vm5, %v2245_v45, %v2220_v21  ;;  %v2302_v22 = vsel %vm903_vm5, %v2301_v51, %v2276_v24  ;;  %v2257_v59 = vrot.slane %v2240_v17, 4  ;;  %v2259_v60 = vrot.slane %v2244_v39, 4 }
 0x547   : > { %v2252_v12 = vperm.slane %v2246_v58, %v3543_v7  ;;  %v2308_v62 = vperm.slane %v2302_v22, %v3543_v7  ;;  %v2313_v25 = vrot.slane %v2296_v55, 4  ;;  %v2316_v63 = vsel %vm903_vm5, 0.0, %v2315_v57 }
 0x548   : > { %v2319_v0 = vrot.slane %v2312_v53, 4  ;;  %v2375_v40 = vsel %vm903_vm5, %v2315_v57, %v2296_v55  ;;  %v2380_v48 = vrot.slane %v2316_v63, 4  ;;  %v2258_v1 = vsel %vm903_vm5, 0.0, %v2257_v59 }
 0x549   : > { %v2260_v5 = vsel %vm903_vm5, 0.0, %v2259_v60  ;;  %v2314_v46 = vsel %vm903_vm5, 0.0, %v2313_v25  ;;  %v2317_v50 = vrot.slane %v2308_v62, 4  ;;  %v2379_v3 = vperm.slane %v2375_v40, %v3533_v54 }
 0x54a   : > { %v2320_v56 = vsel %vm903_vm5, 0.0, %v2319_v0  ;;  %v2381_v61 = vsel %vm903_vm5, %v2380_v48, %v2314_v46  ;;  %v2386_v8 = vsel %vm903_vm5, %v2319_v0, %v2308_v62  ;;  %v2261_v34 = vrot.slane %v2252_v12, 4 }
 0x54b   : > { %v2391_v44 = vrot.slane %v2320_v56, 4  ;;  %v2318_v13 = vsel %vm903_vm5, 0.0, %v2317_v50  ;;  %v2385_v14 = vperm.slane %v2381_v61, %v3533_v54  ;;  %v2390_v15 = vperm.slane %v2386_v8, %v3533_v54 }
 0x54c   : > { %v2263_v16 = vrot.slane %v2256_v6, 4  ;;  %v2262_v19 = vsel %vm903_vm5, 0.0, %v2261_v34  ;;  %v2321_v4 = vsel %vm903_vm5, %v2259_v60, %v2240_v17  ;;  %v2326_v21 = vrot.slane %v2260_v5, 4 }
 0x54d   : > { %v2392_v31 = vsel %vm903_vm5, %v2391_v44, %v2318_v13  ;;  %v2397_v2 = vrot.slane %v2385_v14, 4  ;;  %v2325_v26 = vperm.slane %v2321_v4, %v3533_v54  ;;  %v2399_v32 = vrot.slane %v2379_v3, 4 }
 0x54e   : > { %v2396_v33 = vperm.slane %v2392_v31, %v3533_v54  ;;  %v2264_v24 = vsel %vm903_vm5, 0.0, %v2263_v16  ;;  %v2327_v27 = vsel %vm903_vm5, %v2326_v21, %v2258_v1  ;;  %v2332_v29 = vsel %vm903_vm5, %v2263_v16, %v2252_v12 }
 0x54f   : > { %v2337_v30 = vrot.slane %v2264_v24, 4  ;;  %v2398_v23 = vsel %vm903_vm5, %v2397_v2, %v2379_v3  ;;  %v2331_v36 = vperm.slane %v2327_v27, %v3533_v54  ;;  %v2336_v9 = vperm.slane %v2332_v29, %v3533_v54 }
 0x550   : > { %v2409_v42 = vrot.slane %v2396_v33, 4  ;;  %v2404_v35 = vperm.slane %v2398_v23, %v3543_v7  ;;  %v2345_v38 = vrot.slane %v2325_v26, 4  ;;  %v2400_v43 = vsel %vm903_vm5, %v2385_v14, %v2399_v32 }
 0x551   : > { %v2338_v37 = vsel %vm903_vm5, %v2337_v30, %v2262_v19  ;;  %v2357_v18 = vrot.slane %v2336_v9, 4  ;;  %v2343_v41 = vrot.slane %v2331_v36, 4  ;;  %v2411_v6 = vrot.slane %v2390_v15, 4 }
 0x552   : > { %v2410_v11 = vsel %vm903_vm5, %v2409_v42, %v2390_v15  ;;  %v2342_v39 = vperm.slane %v2338_v37, %v3533_v54  ;;  %v2423_v10 = vrot.slane %v2404_v35, 4  ;;  %v2346_v28 = vsel %vm903_vm5, %v2331_v36, %v2345_v38 }
 0x553   : > { %v2416_v20 = vperm.slane %v2410_v11, %v3543_v7  ;;  %v2354_v17 = vperm.slane %v2346_v28, %v3543_v7  ;;  %v2344_v47 = vsel %vm903_vm5, %v2343_v41, %v2325_v26  ;;  %v2412_v12 = vsel %vm903_vm5, %v2396_v33, %v2411_v6 }
 0x554   : > { %v2358_v45 = vsel %vm903_vm5, %v2342_v39, %v2357_v18  ;;  %v2355_v49 = vrot.slane %v2342_v39, 4  ;;  %v2350_v52 = vperm.slane %v2344_v47, %v3543_v7  ;;  %v2408_v60 = vperm.slane %v2400_v43, %v3543_v7 }
 0x555   : > { %v2424_v51 = vsel %vm903_vm5, %v2416_v20, %v2423_v10  ;;  %v2366_v54 = vperm.slane %v2358_v45, %v3543_v7  ;;  %v2421_v53 = vrot.slane %v2416_v20, 4  ;;  %v2373_v59 = vrot.slane %v2354_v17, 4 }
 0x556   : > { %2433 = vrot.lane.b32.xlu0 %v2424_v51, %s3162_s12  ;;  %v2356_v55 = vsel %vm903_vm5, %v2355_v49, %v2336_v9  ;;  %v2369_v22 = vrot.slane %v2350_v52, 4  ;;  %v2420_v0 = vperm.slane %v2412_v12, %v3543_v7  ;;  %v2427_v5 = vrot.slane %v2408_v60, 4 }
 0x557   : > { %v2371_v57 = vrot.slane %v2366_v54, 4  ;;  %v2362_v58 = vperm.slane %v2356_v55, %v3543_v7  ;;  %v2422_v62 = vsel %vm903_vm5, %v2421_v53, %v2404_v35  ;;  %v2374_v1 = vsel %vm903_vm5, %v2366_v54, %v2373_v59 }
 0x558   : > { %v2425_v46 = vrot.slane %v2420_v0, 4  ;;  %v2428_v50 = vsel %vm903_vm5, %v2420_v0, %v2427_v5 }
 0x559   : > { %v2372_v25 = vsel %vm903_vm5, %v2371_v57, %v2354_v17  ;;  %v2370_v63 = vsel %vm903_vm5, %v2362_v58, %v2369_v22  ;;  %v2367_v40 = vrot.slane %v2362_v58, 4 }
 0x55a   : > { %2439 = vrot.lane.b32.xlu1 %v2372_v25, %s3163_s20  ;;  %2431 = vrot.lane.b32.xlu2 %v2370_v63, %s3162_s12  ;;  %v2426_v56 = vsel %vm903_vm5, %v2425_v46, %v2408_v60 }
 0x55b   : > { %v2368_v48 = vsel %vm903_vm5, %v2367_v40, %v2350_v52 }
 0x55e   : > { %2447 = vrot.lane.b32.xlu0 %v2374_v1, %s3164_s21 }
 0x562   : > { %2449 = vrot.lane.b32.xlu1 %v2428_v50, %s3164_s21  ;;  %2441 = vrot.lane.b32.xlu2 %v2426_v56, %s3163_s20 }
 0x5b4   : > { %v2432_v7 = vpop.permute.xlu2 %2431 }
 0x5b5   : > { %v2453_v8 = vsel %vm1371_vm6, %v2368_v48, %v2432_v7 }
 0x5bc   : > { %v2442_v15 = vpop.permute.xlu2 %2441 }
 0x5c8   : > { %v2434_v3 = vpop.permute.xlu0 %2433 }
 0x5c9   : > { %v2454_v13 = vsel %vm1371_vm6, %v2422_v62, %v2434_v3 }
 0x5ca   : > { %v2457_v16 = vsel %vm2455_vm14, %v2454_v13, %v2442_v15 }
 0x5cc   : > { %v2440_v61 = vpop.permute.xlu1 %2439 }
 0x5cd   : > { %v2456_v44 = vsel %vm2455_vm14, %v2453_v8, %v2440_v61 }
 0x5d0   : > { %v2448_v34 = vpop.permute.xlu0 %2447 }
 0x5d1   : > { %v2459_v14 = vsel %vm2458_vm15, %v2456_v44, %v2448_v34 }
 0x5d2   : > { %2461 = vst.msk [vmem:[#allocation17] sm:$0xff] %vm815_vm4, %v2459_v14 }
 0x5d4   : > { %v2450_v31 = vpop.permute.xlu1 %2449 }
 0x5d5   : > { %v2460_v19 = vsel %vm2458_vm15, %v2457_v16, %v2450_v31 }
 0x5d6   : > { %2462 = vst.msk [vmem:[#allocation17 + $0x8] sm:$0xff] %vm815_vm4, %v2460_v19 }
 0x5d7 PF: > { %p2716_p3 = scmp.eq.s32.totalorder %s3247_s15, 1  ;;  %s4126_s2 = sld [smem:[#allocation32_spill]] }
 0x5d8   : > { %s3165_s23 = smov [#allocation17]   ;;  %s3166_s29 = smov 128  }
 0x5d9   : > { %s2471_s26 = sshll.u32 %s3165_s23, 4  ;;  %s3167_s1 = smov 8   ;;  %s2472_s26 = int_to_ptr.vmem [resolvable:$true] %s2471_s26 }
 0x5dd   : > { %s2473_s14 = sshll.u32 %s4126_s2, 4  ;;  %s2474_s14 = int_to_ptr.hbm [resolvable:$true] %s2473_s14 }
 0x5de   : > { %2684 = dma.vmem_to_hbm [thread:$0]  (%p2716_p3), %s2472_s26, 256, %s2474_s14, [#allocation8], %s3166_s29, %s3166_s29, %s3167_s1  }
 0x5df   : > { %3114 = dma.done.wait (%p2716_p3), [#allocation8], 256  }
 0x5e0   : > { %3116 = vsyncadd (%p2716_p3), [#allocation8], 4294967040 }
 0x5e1 PF: > { %s4127_s13 = sld [smem:[#allocation25_spill]]  ;;  %s4132_s30 = smov %s3123_s10 }
 0x5e2   : > { %s4128_s16 = sld [smem:[#allocation23_spill]] }
 0x5e3   : > { %s4129_s11 = sld [smem:[#allocation27_spill]] }
 0x5e4   : > { %s4130_s12 = sld [smem:[#allocation24_spill]] }
 0x5e7   : > { %s26_s14 = sadd.s32 1, %s4127_s13   ;;  %s4131_s13 = sld [smem:[#allocation26_spill]] }
 0x5e8   : > { %p23_p4 = scmp.ge.s32.totalorder %s26_s14, 4   ;;  %s4133_s10 = smov %s4128_s16 }
 0x5ea   :  { %25 = sbr.rel (!%p23_p4) target bundleno = 14 (0xe), region = 131 }
 0x5ef   :  { %2490 = vsyncpa [#allocation7], 1 }
 0x5f0   :  { %2492 = vsyncpa [#allocation7 + $0x1], 1 }
 0x5f1   :  { %2493 = vsyncpa [#allocation10], 1 }
 0x5f2   :  { %2495 = vsyncpa [#allocation10 + $0x1], 1 }
 0x5f3   :  { %2496 = vsyncpa [#allocation13], 1 }
 0x5f4   :  { %2497 = vsyncpa [#allocation16], 1 }
 0x5f5   :  { %2498 = vsyncpa [#allocation8], 1 }
 0x5f6   :  { %2500 = vsyncpa [#allocation8 + $0x1], 1 }

</bundles_post_ra>
